<compile_context>
chip_gen: v7x
topology: tpu7x:2x2x1
jax: 0.10.0
libtpu: 0.0.40
codegen_flags: <defaults>
</compile_context>

<pallas_src>
import math
from functools import partial

import jax
import jax.numpy as jnp
from jax import lax
from jax.experimental import pallas as pl
from jax.experimental.pallas import tpu as pltpu


def _transformer_block_kernel(
    x_ref, cos_ref, sin_ref,
    wqkv_ref, wo_ref, w1_ref, w3_ref, w2_ref,
    attn_nw_ref, ffn_nw_ref,
    o_ref,
    qkv_scr, attn_scr,
    *, dim, n_head, n_kv_head, head_dim, block_b, seq_len, eps,
):
    S = seq_len
    hd = head_dim
    kv_size = n_kv_head * head_dim
    rep = n_head // n_kv_head
    scale = 1.0 / math.sqrt(head_dim)
    bf16 = jnp.bfloat16
    f32 = jnp.float32

    x = x_ref[...].astype(f32)                        # (R, D), R = block_b*S

    def rmsnorm(v, w):
        ms = jnp.mean(v * v, axis=-1, keepdims=True)
        return (v * lax.rsqrt(ms + eps)) * w

    # ---------------- attention branch ----------------
    h_in = rmsnorm(x, attn_nw_ref[...])
    qkv = jnp.dot(h_in.astype(bf16), wqkv_ref[...],
                  preferred_element_type=f32)         # (R, dim + 2*kv) f32

    # de-interleaved RoPE: each q/k head's columns are [even | odd] halves
    # (wqkv columns were permuted host-side), cos = [c|c], sin = [-s|s].
    cos = cos_ref[...].astype(f32)                    # (R, hd)
    sin = sin_ref[...].astype(f32)

    def rope(t):                                      # t: (R, hd) f32
        return t * cos + pltpu.roll(t, hd // 2, axis=1) * sin

    for h in range(n_head):
        c0 = h * hd
        qkv_scr[:, c0:c0 + hd] = rope(qkv[:, c0:c0 + hd]).astype(bf16)
    for h in range(n_kv_head):
        c0 = dim + h * hd
        qkv_scr[:, c0:c0 + hd] = rope(qkv[:, c0:c0 + hd]).astype(bf16)
    qkv_scr[:, dim + kv_size:] = qkv[:, dim + kv_size:].astype(bf16)  # v, dense

    rowi = lax.broadcasted_iota(jnp.int32, (S, S), 0)
    coli = lax.broadcasted_iota(jnp.int32, (S, S), 1)
    causal = coli <= rowi

    # per-(sample, head) attention; static trace-time loop -> static
    # lane-aligned slices and full LLO scheduling visibility.  Each head's
    # normalised output is staged at its own column offset; the wo projection
    # is a single full-K matmul below.
    # TODO(synk): tile the KV axis (online softmax) for S >~ 512.
    for b in range(block_b):
        r0 = b * S
        for hq in range(n_head):
            hk = hq // rep
            qh = qkv_scr[r0:r0 + S, hq * hd:(hq + 1) * hd]
            kh = qkv_scr[r0:r0 + S, dim + hk * hd:dim + (hk + 1) * hd]
            vh = qkv_scr[r0:r0 + S,
                         dim + kv_size + hk * hd:dim + kv_size + (hk + 1) * hd]
            sc = lax.dot_general(qh, kh, (((1,), (1,)), ((), ())),
                                 preferred_element_type=f32) * scale
            sc = jnp.where(causal, sc, -1e30)
            m = jnp.max(sc, axis=-1, keepdims=True)
            p = jnp.exp(sc - m)                       # f32 softmax statistics
            denom = jnp.sum(p, axis=-1, keepdims=True)
            oh = jnp.dot(p.astype(bf16), vh, preferred_element_type=f32)
            oh = oh * (1.0 / denom)                   # exact normalisation
            attn_scr[r0:r0 + S, hq * hd:(hq + 1) * hd] = oh.astype(bf16)

    # single full-K output projection (replaces per-head fused wo + RMW acc)
    attn_out = jnp.dot(attn_scr[...], wo_ref[...], preferred_element_type=f32)
    h = x + attn_out                                  # f32 residual

    # ---------------- feed-forward branch ----------------
    h2 = rmsnorm(h, ffn_nw_ref[...])
    h2b = h2.astype(bf16)
    g = jnp.dot(h2b, w1_ref[...], preferred_element_type=f32)
    u = jnp.dot(h2b, w3_ref[...], preferred_element_type=f32)
    act = (g * jax.nn.sigmoid(g)) * u                 # SiLU in f32
    ffn = jnp.dot(act.astype(bf16), w2_ref[...], preferred_element_type=f32)
    o_ref[...] = h + ffn


def _estimate_vmem_bytes(block_b, S, D, total, hidden, head_dim):
    """Rough in-flight VMEM bytes for one grid step (conservative)."""
    R = block_b * S
    stream = 2 * (R * D * 2 + 2 * R * head_dim * 2 + R * D * 4)   # dbl-buffered x/cos/sin/out
    weights = 2 * (D * total + D * D + 3 * D * hidden) + 2 * D * 4  # bf16, single buffer
    scratch = 2 * (R * total + R * D)                               # bf16 qkv + attn staging
    live = 4 * (3 * R * hidden + 4 * R * D + 3 * S * S)             # f32 temporaries
    return stream + weights + scratch + live


def _pick_block_b(B, S, D, total, hidden, head_dim, vmem_budget):
    """Fold batch samples per grid step (bigger GEMMs) under a VMEM budget,
    keeping grid >= 2 so v7x's two TensorCores both get work."""
    min_grid = 2 if B >= 2 else 1
    best = 1
    for d in range(1, B + 1):
        if B % d:
            continue
        R = d * S
        if R % 8 != 0 and R != B * S:
            continue                                   # (8,128) block constraint
        if R > 1024 or (B // d) < min_grid:
            continue
        if _estimate_vmem_bytes(d, S, D, total, hidden, head_dim) > vmem_budget:
            continue
        best = d
    return best


def _vmem_capacity_bytes():
    try:
        return int(pltpu.get_tpu_info().vmem_capacity_bytes)
    except Exception:
        return 64 * 1024 * 1024   # conservative fallback (v7x per-core VMEM)


def _resident_spec(block_shape, index_map):
    """Single-buffered BlockSpec for grid-constant operands (weights)."""
    if hasattr(pl, "Buffered"):
        try:
            return pl.BlockSpec(block_shape, index_map,
                                pipeline_mode=pl.Buffered(1))
        except TypeError:
            pass
    return pl.BlockSpec(block_shape, index_map)


def transformer_block(x, freqs_cis, params, *, n_head, n_kv_head, eps=1e-5,
                      block_b=None):
    B, S, D = x.shape
    head_dim = D // n_head
    kv_size = n_kv_head * head_dim
    total = D + 2 * kv_size
    hidden = params["w1_t"].shape[1]
    assert D % n_head == 0 and n_head % n_kv_head == 0 and head_dim % 2 == 0

    vmem_cap = _vmem_capacity_bytes()
    if block_b is None:
        block_b = _pick_block_b(B, S, D, total, hidden, head_dim,
                                vmem_budget=int(0.70 * vmem_cap))
    assert B % block_b == 0
    R = block_b * S
    assert R % 8 == 0 or block_b == B
    grid = (B // block_b,)

    bf16 = jnp.bfloat16

    # --- host-side prep --------------------------------------------------
    # De-interleave RoPE: permute each q/k head's wqkv columns into
    # [even | odd] halves so in-kernel RoPE is a single roll(head_dim//2).
    perm_head = jnp.concatenate([jnp.arange(0, head_dim, 2),
                                 jnp.arange(1, head_dim, 2)])
    q_cols = (jnp.arange(n_head)[:, None] * head_dim + perm_head).reshape(-1)
    k_cols = D + (jnp.arange(n_kv_head)[:, None] * head_dim + perm_head).reshape(-1)
    v_cols = D + kv_size + jnp.arange(kv_size)
    col_perm = jnp.concatenate([q_cols, k_cols, v_cols])

    wqkv = params["wqkv_t"][:, col_perm].astype(bf16)                 # (D, total)
    wo = params["wo_t"].astype(bf16)                                  # (D, D)
    w1 = params["w1_t"].astype(bf16)                                  # (D, hidden)
    w3 = params["w3_t"].astype(bf16)
    w2 = params["w2_t"].astype(bf16)                                  # (hidden, D)

    # cos/sin for the de-interleaved layout: [c | c], [-s | s] per head_dim,
    # per (sample, position) since RandAR permutes positions per sample.
    c = freqs_cis[..., 0].reshape(B * S, head_dim // 2)
    s = freqs_cis[..., 1].reshape(B * S, head_dim // 2)
    cos = jnp.concatenate([c, c], axis=-1).astype(bf16)
    sin = jnp.concatenate([-s, s], axis=-1).astype(bf16)

    x2 = x.reshape(B * S, D).astype(bf16)          # streamed activations in bf16

    kernel = partial(_transformer_block_kernel, dim=D, n_head=n_head,
                     n_kv_head=n_kv_head, head_dim=head_dim,
                     block_b=block_b, seq_len=S, eps=eps)

    BS = B * S
    flops = (2 * BS * (D * total + D * D + 3 * D * hidden)
             + 4 * B * n_head * S * S * head_dim)
    transcendentals = B * n_head * S * S + BS * hidden
    bytes_accessed = (BS * D * 2 + 2 * BS * head_dim * 2 + BS * D * 4
                      + 2 * (D * total + D * D + 3 * D * hidden) + 2 * D * 4)

    est = _estimate_vmem_bytes(block_b, S, D, total, hidden, head_dim)
    vmem_limit = min(max(2 * est, 32 * 1024 * 1024), int(0.90 * vmem_cap))

    row_map = lambda i: (i, 0)
    const2 = lambda i: (0, 0)

    out2 = pl.pallas_call(
        kernel,
        out_shape=jax.ShapeDtypeStruct((BS, D), jnp.float32),
        grid_spec=pltpu.PrefetchScalarGridSpec(
            num_scalar_prefetch=0,
            grid=grid,
            in_specs=[
                pl.BlockSpec((R, D), row_map),                 # x (bf16 rows)
                pl.BlockSpec((R, head_dim), row_map),          # cos (bf16)
                pl.BlockSpec((R, head_dim), row_map),          # sin (bf16, sign-baked)
                _resident_spec((D, total), const2),            # wqkv^T (permuted) bf16
                _resident_spec((D, D), const2),                # wo^T              bf16
                _resident_spec((D, hidden), const2),           # w1^T              bf16
                _resident_spec((D, hidden), const2),           # w3^T              bf16
                _resident_spec((hidden, D), const2),           # w2^T              bf16
                _resident_spec((1, D), const2),                # attention_norm weight (f32)
                _resident_spec((1, D), const2),                # ffn_norm weight       (f32)
            ],
            out_specs=pl.BlockSpec((R, D), row_map),
            scratch_shapes=[
                pltpu.VMEM((R, total), bf16),   # roped q | roped k | v  (lane-dense 2-D)
                pltpu.VMEM((R, D), bf16),       # attention-output staging
            ],
        ),
        compiler_params=pltpu.CompilerParams(
            dimension_semantics=("parallel",),
            vmem_limit_bytes=vmem_limit,
        ),
        cost_estimate=pl.CostEstimate(flops=flops,
                                      transcendentals=transcendentals,
                                      bytes_accessed=bytes_accessed),
    )(x2, cos, sin, wqkv, wo, w1, w3, w2,
      params["attn_norm_w"], params["ffn_norm_w"])
    return out2.reshape(B, S, D)


def reference(x, freqs_cis, params, n_head, n_kv_head, eps=1e-5):
    """Pure-JAX (f32) replica of the PyTorch forward (eval mode)."""
    B, S, D = x.shape
    hd = D // n_head
    kv = n_kv_head * hd

    def rms(v, w):
        return v * lax.rsqrt(jnp.mean(v * v, -1, keepdims=True) + eps) * w

    def rope(t, fc):
        H = t.shape[2]
        ts = t.reshape(B, S, H, hd // 2, 2)
        fc = fc.reshape(B, S, 1, hd // 2, 2)
        o0 = ts[..., 0] * fc[..., 0] - ts[..., 1] * fc[..., 1]
        o1 = ts[..., 1] * fc[..., 0] + ts[..., 0] * fc[..., 1]
        return jnp.stack([o0, o1], -1).reshape(B, S, H, hd)

    hin = rms(x, params["attn_norm_w"][0])
    qkv = hin @ params["wqkv_t"]
    q, k, v = qkv[..., :D], qkv[..., D:D + kv], qkv[..., D + kv:]
    q = q.reshape(B, S, n_head, hd)
    k = k.reshape(B, S, n_kv_head, hd)
    v = v.reshape(B, S, n_kv_head, hd)
    q, k = rope(q, freqs_cis), rope(k, freqs_cis)
    q, k, v = (t.transpose(0, 2, 1, 3) for t in (q, k, v))
    rep = n_head // n_kv_head
    k = jnp.repeat(k, rep, axis=1)
    v = jnp.repeat(v, rep, axis=1)
    s = jnp.einsum('bhqd,bhkd->bhqk', q, k) / math.sqrt(hd)
    mask = jnp.tril(jnp.ones((S, S), bool))
    s = jnp.where(mask, s, -jnp.inf)
    p = jax.nn.softmax(s, axis=-1)
    o = jnp.einsum('bhqk,bhkd->bhqd', p, v).transpose(0, 2, 1, 3).reshape(B, S, D)
    h = x + o @ params["wo_t"]
    h2 = rms(h, params["ffn_norm_w"][0])
    g = h2 @ params["w1_t"]
    u = h2 @ params["w3_t"]
    return h + (jax.nn.silu(g) * u) @ params["w2_t"]


if __name__ == "__main__":
    B, S = 2, 16
    dim, n_head, n_kv_head = 64, 4, 2
    head_dim = dim // n_head
    multiple_of = 32
    hidden = int(2 * (4 * dim) / 3)
    hidden = multiple_of * ((hidden + multiple_of - 1) // multiple_of)   # 192
    kv_size = n_kv_head * head_dim
    total = dim + 2 * kv_size

    key = jax.random.PRNGKey(0)
    keys = jax.random.split(key, 10)
    x = jax.random.normal(keys[0], (B, S, dim), jnp.float32)

    params = {
        "wqkv_t": 0.02 * jax.random.normal(keys[1], (dim, total), jnp.float32),
        "wo_t":   0.02 * jax.random.normal(keys[2], (dim, dim), jnp.float32),
        "w1_t":   0.02 * jax.random.normal(keys[3], (dim, hidden), jnp.float32),
        "w3_t":   0.02 * jax.random.normal(keys[4], (dim, hidden), jnp.float32),
        "w2_t":   0.02 * jax.random.normal(keys[5], (hidden, dim), jnp.float32),
        "attn_norm_w": 1.0 + 0.1 * jax.random.normal(keys[6], (1, dim), jnp.float32),
        "ffn_norm_w":  1.0 + 0.1 * jax.random.normal(keys[7], (1, dim), jnp.float32),
    }

    # RandAR-style per-sample rotary freqs_cis: [B, S, head_dim//2, 2]
    rope_base = 10000.0
    inv_freq = 1.0 / (rope_base ** (jnp.arange(0, head_dim, 2, dtype=jnp.float32) / head_dim))
    pos = jax.random.randint(keys[8], (B, S), 0, 256).astype(jnp.float32)
    ang = pos[..., None] * inv_freq[None, None, :]                # (B, S, hd//2)
    freqs_cis = jnp.stack([jnp.cos(ang), jnp.sin(ang)], axis=-1)  # (B, S, hd//2, 2)

    out = transformer_block(x, freqs_cis, params, n_head=n_head, n_kv_head=n_kv_head)
    out = jax.block_until_ready(out)

    ref = reference(x, freqs_cis, params, n_head, n_kv_head)
    assert out.shape == (B, S, dim)
    err = float(jnp.max(jnp.abs(out - ref)))
    # bf16 streamed activations + bf16 MXU operands vs the f32 reference
    assert jnp.allclose(out, ref, rtol=3e-2, atol=3e-2), f"max abs err {err}"
    print("KERNEL_OK")
</pallas_src>

<mosaic_0001>
module attributes {stable_mosaic.version = 11 : i64} {
  func.func @_transformer_block_kernel(%arg0: i32, %arg1: memref<16x64xbf16, #tpu.memory_space<vmem>>, %arg2: memref<16x16xbf16, #tpu.memory_space<vmem>>, %arg3: memref<16x16xbf16, #tpu.memory_space<vmem>>, %arg4: memref<64x128xbf16, #tpu.memory_space<vmem>>, %arg5: memref<64x64xbf16, #tpu.memory_space<vmem>>, %arg6: memref<64x192xbf16, #tpu.memory_space<vmem>>, %arg7: memref<64x192xbf16, #tpu.memory_space<vmem>>, %arg8: memref<192x64xbf16, #tpu.memory_space<vmem>>, %arg9: memref<1x64xf32, #tpu.memory_space<vmem>>, %arg10: memref<1x64xf32, #tpu.memory_space<vmem>>, %arg11: memref<16x64xf32, #tpu.memory_space<vmem>>, %arg12: memref<16x128xbf16, #tpu.memory_space<vmem>>, %arg13: memref<16x64xbf16, #tpu.memory_space<vmem>>) attributes {dimension_semantics = [#tpu.dimension_semantics<parallel>], iteration_bounds = array<i64: 2>, scalar_prefetch = 0 : i64, scratch_operands = 2 : i64, tpu.core_type = #tpu.core_type<tc>, window_params = [{transform_indices = @transform_0, window_bounds = array<i64: 16, 64>}, {transform_indices = @transform_1, window_bounds = array<i64: 16, 16>}, {transform_indices = @transform_2, window_bounds = array<i64: 16, 16>}, {pipeline_mode = #tpu.pipeline_mode<synchronous>, transform_indices = @transform_3, window_bounds = array<i64: 64, 128>}, {pipeline_mode = #tpu.pipeline_mode<synchronous>, transform_indices = @transform_4, window_bounds = array<i64: 64, 64>}, {pipeline_mode = #tpu.pipeline_mode<synchronous>, transform_indices = @transform_5, window_bounds = array<i64: 64, 192>}, {pipeline_mode = #tpu.pipeline_mode<synchronous>, transform_indices = @transform_6, window_bounds = array<i64: 64, 192>}, {pipeline_mode = #tpu.pipeline_mode<synchronous>, transform_indices = @transform_7, window_bounds = array<i64: 192, 64>}, {pipeline_mode = #tpu.pipeline_mode<synchronous>, transform_indices = @transform_8, window_bounds = array<i64: 1, 64>}, {pipeline_mode = #tpu.pipeline_mode<synchronous>, transform_indices = @transform_9, window_bounds = array<i64: 1, 64>}, {transform_indices = @transform_10, window_bounds = array<i64: 16, 64>}]} {
    %c0 = arith.constant 0 : index
    %c0_0 = arith.constant 0 : index
    %0 = vector.load %arg1[%c0, %c0_0] : memref<16x64xbf16, #tpu.memory_space<vmem>>, vector<16x64xbf16>
    %1 = arith.extf %0 : vector<16x64xbf16> to vector<16x64xf32>
    %c0_1 = arith.constant 0 : index
    %c0_2 = arith.constant 0 : index
    %2 = vector.load %arg9[%c0_1, %c0_2] : memref<1x64xf32, #tpu.memory_space<vmem>>, vector<1x64xf32>
    %3 = arith.mulf %1, %1 : vector<16x64xf32>
    %cst = arith.constant dense<0.000000e+00> : vector<16xf32>
    %4 = vector.multi_reduction <add>, %3, %cst [1] : vector<16x64xf32> to vector<16xf32>
    %5 = vector.shape_cast %4 : vector<16xf32> to vector<16x1xf32>
    %cst_3 = arith.constant 6.400000e+01 : f32
    %6 = vector.broadcast %cst_3 : f32 to vector<16x1xf32>
    %7 = arith.divf %5, %6 : vector<16x1xf32>
    %cst_4 = arith.constant 9.99999974E-6 : f32
    %8 = vector.broadcast %cst_4 : f32 to vector<16x1xf32>
    %9 = arith.addf %7, %8 : vector<16x1xf32>
    %10 = math.rsqrt %9 : vector<16x1xf32>
    %11 = vector.broadcast %10 : vector<16x1xf32> to vector<16x64xf32>
    %12 = arith.mulf %1, %11 : vector<16x64xf32>
    %13 = vector.broadcast %2 : vector<1x64xf32> to vector<16x64xf32>
    %14 = arith.mulf %12, %13 : vector<16x64xf32>
    %15 = arith.truncf %14 : vector<16x64xf32> to vector<16x64xbf16>
    %c0_5 = arith.constant 0 : index
    %c0_6 = arith.constant 0 : index
    %16 = vector.load %arg4[%c0_5, %c0_6] : memref<64x128xbf16, #tpu.memory_space<vmem>>, vector<64x128xbf16>
    %cst_7 = arith.constant dense<0.000000e+00> : vector<16x128xf32>
    %17 = tpu.matmul %15, %16, %cst_7 {dimension_numbers = #tpu.dot_dimension_numbers<[1], [0], [0], [1], [0, 0, 1, 1], [], []>} : vector<16x64xbf16>, vector<64x128xbf16>, vector<16x128xf32> -> vector<16x128xf32>
    %c0_8 = arith.constant 0 : index
    %c0_9 = arith.constant 0 : index
    %18 = vector.load %arg2[%c0_8, %c0_9] : memref<16x16xbf16, #tpu.memory_space<vmem>>, vector<16x16xbf16>
    %19 = arith.extf %18 : vector<16x16xbf16> to vector<16x16xf32>
    %c0_10 = arith.constant 0 : index
    %c0_11 = arith.constant 0 : index
    %20 = vector.load %arg3[%c0_10, %c0_11] : memref<16x16xbf16, #tpu.memory_space<vmem>>, vector<16x16xbf16>
    %21 = arith.extf %20 : vector<16x16xbf16> to vector<16x16xf32>
    %22 = vector.extract_strided_slice %17 {offsets = [0, 0], sizes = [16, 16], strides = [1, 1]} : vector<16x128xf32> to vector<16x16xf32>
    %23 = arith.mulf %22, %19 : vector<16x16xf32>
    %c8_i32 = arith.constant 8 : i32
    %24 = tpu.dynamic_rotate %22 by %c8_i32 dim 1 : vector<16x16xf32>, i32 -> vector<16x16xf32>
    %25 = arith.mulf %24, %21 : vector<16x16xf32>
    %26 = arith.addf %23, %25 : vector<16x16xf32>
    %27 = arith.truncf %26 : vector<16x16xf32> to vector<16x16xbf16>
    %c0_12 = arith.constant 0 : index
    %c0_13 = arith.constant 0 : index
    %28 = vector.load %arg12[%c0_12, %c0_13] : memref<16x128xbf16, #tpu.memory_space<vmem>>, vector<16x16xbf16>
    tpu.vector_store %arg12[%c0_12, %c0_13], %27 {strides = array<i32>} : memref<16x128xbf16, #tpu.memory_space<vmem>>, vector<16x16xbf16>,
    %29 = vector.extract_strided_slice %17 {offsets = [0, 16], sizes = [16, 16], strides = [1, 1]} : vector<16x128xf32> to vector<16x16xf32>
    %30 = arith.mulf %29, %19 : vector<16x16xf32>
    %c8_i32_14 = arith.constant 8 : i32
    %31 = tpu.dynamic_rotate %29 by %c8_i32_14 dim 1 : vector<16x16xf32>, i32 -> vector<16x16xf32>
    %32 = arith.mulf %31, %21 : vector<16x16xf32>
    %33 = arith.addf %30, %32 : vector<16x16xf32>
    %34 = arith.truncf %33 : vector<16x16xf32> to vector<16x16xbf16>
    %c0_15 = arith.constant 0 : index
    %c16 = arith.constant 16 : index
    %35 = vector.load %arg12[%c0_15, %c16] : memref<16x128xbf16, #tpu.memory_space<vmem>>, vector<16x16xbf16>
    tpu.vector_store %arg12[%c0_15, %c16], %34 {strides = array<i32>} : memref<16x128xbf16, #tpu.memory_space<vmem>>, vector<16x16xbf16>,
    %36 = vector.extract_strided_slice %17 {offsets = [0, 32], sizes = [16, 16], strides = [1, 1]} : vector<16x128xf32> to vector<16x16xf32>
    %37 = arith.mulf %36, %19 : vector<16x16xf32>
    %c8_i32_16 = arith.constant 8 : i32
    %38 = tpu.dynamic_rotate %36 by %c8_i32_16 dim 1 : vector<16x16xf32>, i32 -> vector<16x16xf32>
    %39 = arith.mulf %38, %21 : vector<16x16xf32>
    %40 = arith.addf %37, %39 : vector<16x16xf32>
    %41 = arith.truncf %40 : vector<16x16xf32> to vector<16x16xbf16>
    %c0_17 = arith.constant 0 : index
    %c32 = arith.constant 32 : index
    %42 = vector.load %arg12[%c0_17, %c32] : memref<16x128xbf16, #tpu.memory_space<vmem>>, vector<16x16xbf16>
    tpu.vector_store %arg12[%c0_17, %c32], %41 {strides = array<i32>} : memref<16x128xbf16, #tpu.memory_space<vmem>>, vector<16x16xbf16>,
    %43 = vector.extract_strided_slice %17 {offsets = [0, 48], sizes = [16, 16], strides = [1, 1]} : vector<16x128xf32> to vector<16x16xf32>
    %44 = arith.mulf %43, %19 : vector<16x16xf32>
    %c8_i32_18 = arith.constant 8 : i32
    %45 = tpu.dynamic_rotate %43 by %c8_i32_18 dim 1 : vector<16x16xf32>, i32 -> vector<16x16xf32>
    %46 = arith.mulf %45, %21 : vector<16x16xf32>
    %47 = arith.addf %44, %46 : vector<16x16xf32>
    %48 = arith.truncf %47 : vector<16x16xf32> to vector<16x16xbf16>
    %c0_19 = arith.constant 0 : index
    %c48 = arith.constant 48 : index
    %49 = vector.load %arg12[%c0_19, %c48] : memref<16x128xbf16, #tpu.memory_space<vmem>>, vector<16x16xbf16>
    tpu.vector_store %arg12[%c0_19, %c48], %48 {strides = array<i32>} : memref<16x128xbf16, #tpu.memory_space<vmem>>, vector<16x16xbf16>,
    %50 = vector.extract_strided_slice %17 {offsets = [0, 64], sizes = [16, 16], strides = [1, 1]} : vector<16x128xf32> to vector<16x16xf32>
    %51 = arith.mulf %50, %19 : vector<16x16xf32>
    %c8_i32_20 = arith.constant 8 : i32
    %52 = tpu.dynamic_rotate %50 by %c8_i32_20 dim 1 : vector<16x16xf32>, i32 -> vector<16x16xf32>
    %53 = arith.mulf %52, %21 : vector<16x16xf32>
    %54 = arith.addf %51, %53 : vector<16x16xf32>
    %55 = arith.truncf %54 : vector<16x16xf32> to vector<16x16xbf16>
    %c0_21 = arith.constant 0 : index
    %c64 = arith.constant 64 : index
    %56 = vector.load %arg12[%c0_21, %c64] : memref<16x128xbf16, #tpu.memory_space<vmem>>, vector<16x16xbf16>
    tpu.vector_store %arg12[%c0_21, %c64], %55 {strides = array<i32>} : memref<16x128xbf16, #tpu.memory_space<vmem>>, vector<16x16xbf16>,
    %57 = vector.extract_strided_slice %17 {offsets = [0, 80], sizes = [16, 16], strides = [1, 1]} : vector<16x128xf32> to vector<16x16xf32>
    %58 = arith.mulf %57, %19 : vector<16x16xf32>
    %c8_i32_22 = arith.constant 8 : i32
    %59 = tpu.dynamic_rotate %57 by %c8_i32_22 dim 1 : vector<16x16xf32>, i32 -> vector<16x16xf32>
    %60 = arith.mulf %59, %21 : vector<16x16xf32>
    %61 = arith.addf %58, %60 : vector<16x16xf32>
    %62 = arith.truncf %61 : vector<16x16xf32> to vector<16x16xbf16>
    %c0_23 = arith.constant 0 : index
    %c80 = arith.constant 80 : index
    %63 = vector.load %arg12[%c0_23, %c80] : memref<16x128xbf16, #tpu.memory_space<vmem>>, vector<16x16xbf16>
    tpu.vector_store %arg12[%c0_23, %c80], %62 {strides = array<i32>} : memref<16x128xbf16, #tpu.memory_space<vmem>>, vector<16x16xbf16>,
    %64 = vector.extract_strided_slice %17 {offsets = [0, 96], sizes = [16, 32], strides = [1, 1]} : vector<16x128xf32> to vector<16x32xf32>
    %65 = arith.truncf %64 : vector<16x32xf32> to vector<16x32xbf16>
    %c0_24 = arith.constant 0 : index
    %c96 = arith.constant 96 : index
    %66 = vector.load %arg12[%c0_24, %c96] : memref<16x128xbf16, #tpu.memory_space<vmem>>, vector<16x32xbf16>
    tpu.vector_store %arg12[%c0_24, %c96], %65 {strides = array<i32>} : memref<16x128xbf16, #tpu.memory_space<vmem>>, vector<16x32xbf16>,
    %67 = tpu.iota {dimensions = array<i32: 0>} : vector<16x16xi32>
    %68 = tpu.iota {dimensions = array<i32: 1>} : vector<16x16xi32>
    %69 = arith.cmpi sle, %68, %67 : vector<16x16xi32>
    %c0_25 = arith.constant 0 : index
    %c0_26 = arith.constant 0 : index
    %70 = vector.load %arg12[%c0_25, %c0_26] : memref<16x128xbf16, #tpu.memory_space<vmem>>, vector<16x16xbf16>
    %c0_27 = arith.constant 0 : index
    %c64_28 = arith.constant 64 : index
    %71 = vector.load %arg12[%c0_27, %c64_28] : memref<16x128xbf16, #tpu.memory_space<vmem>>, vector<16x16xbf16>
    %c0_29 = arith.constant 0 : index
    %c96_30 = arith.constant 96 : index
    %72 = vector.load %arg12[%c0_29, %c96_30] : memref<16x128xbf16, #tpu.memory_space<vmem>>, vector<16x16xbf16>
    %cst_31 = arith.constant dense<0.000000e+00> : vector<16x16xf32>
    %73 = tpu.matmul %70, %71, %cst_31 {dimension_numbers = #tpu.dot_dimension_numbers<[1], [1], [0], [0], [0, 0, 1, 0], [], []>} : vector<16x16xbf16>, vector<16x16xbf16>, vector<16x16xf32> -> vector<16x16xf32>
    %cst_32 = arith.constant 2.500000e-01 : f32
    %74 = vector.broadcast %cst_32 : f32 to vector<16x16xf32>
    %75 = arith.mulf %73, %74 : vector<16x16xf32>
    %cst_33 = arith.constant -1.000000e+30 : f32
    %76 = vector.broadcast %cst_33 : f32 to vector<16x16xf32>
    %77 = arith.select %69, %75, %76 : vector<16x16xi1>, vector<16x16xf32>
    %cst_34 = arith.constant dense<0xFF800000> : vector<16xf32>
    %78 = vector.multi_reduction <maximumf>, %77, %cst_34 [1] : vector<16x16xf32> to vector<16xf32>
    %79 = vector.shape_cast %78 : vector<16xf32> to vector<16x1xf32>
    %80 = vector.broadcast %79 : vector<16x1xf32> to vector<16x16xf32>
    %81 = arith.subf %77, %80 : vector<16x16xf32>
    %82 = math.exp %81 : vector<16x16xf32>
    %cst_35 = arith.constant dense<0.000000e+00> : vector<16xf32>
    %83 = vector.multi_reduction <add>, %82, %cst_35 [1] : vector<16x16xf32> to vector<16xf32>
    %84 = vector.shape_cast %83 : vector<16xf32> to vector<16x1xf32>
    %85 = arith.truncf %82 : vector<16x16xf32> to vector<16x16xbf16>
    %cst_36 = arith.constant dense<0.000000e+00> : vector<16x16xf32>
    %86 = tpu.matmul %85, %72, %cst_36 {dimension_numbers = #tpu.dot_dimension_numbers<[1], [0], [0], [1], [0, 0, 1, 1], [], []>} : vector<16x16xbf16>, vector<16x16xbf16>, vector<16x16xf32> -> vector<16x16xf32>
    %cst_37 = arith.constant 1.000000e+00 : f32
    %87 = vector.broadcast %cst_37 : f32 to vector<16x1xf32>
    %88 = arith.divf %87, %84 : vector<16x1xf32>
    %89 = vector.broadcast %88 : vector<16x1xf32> to vector<16x16xf32>
    %90 = arith.mulf %86, %89 : vector<16x16xf32>
    %91 = arith.truncf %90 : vector<16x16xf32> to vector<16x16xbf16>
    %c0_38 = arith.constant 0 : index
    %c0_39 = arith.constant 0 : index
    %92 = vector.load %arg13[%c0_38, %c0_39] : memref<16x64xbf16, #tpu.memory_space<vmem>>, vector<16x16xbf16>
    tpu.vector_store %arg13[%c0_38, %c0_39], %91 {strides = array<i32>} : memref<16x64xbf16, #tpu.memory_space<vmem>>, vector<16x16xbf16>,
    %c0_40 = arith.constant 0 : index
    %c16_41 = arith.constant 16 : index
    %93 = vector.load %arg12[%c0_40, %c16_41] : memref<16x128xbf16, #tpu.memory_space<vmem>>, vector<16x16xbf16>
    %c0_42 = arith.constant 0 : index
    %c64_43 = arith.constant 64 : index
    %94 = vector.load %arg12[%c0_42, %c64_43] : memref<16x128xbf16, #tpu.memory_space<vmem>>, vector<16x16xbf16>
    %c0_44 = arith.constant 0 : index
    %c96_45 = arith.constant 96 : index
    %95 = vector.load %arg12[%c0_44, %c96_45] : memref<16x128xbf16, #tpu.memory_space<vmem>>, vector<16x16xbf16>
    %cst_46 = arith.constant dense<0.000000e+00> : vector<16x16xf32>
    %96 = tpu.matmul %93, %94, %cst_46 {dimension_numbers = #tpu.dot_dimension_numbers<[1], [1], [0], [0], [0, 0, 1, 0], [], []>} : vector<16x16xbf16>, vector<16x16xbf16>, vector<16x16xf32> -> vector<16x16xf32>
    %cst_47 = arith.constant 2.500000e-01 : f32
    %97 = vector.broadcast %cst_47 : f32 to vector<16x16xf32>
    %98 = arith.mulf %96, %97 : vector<16x16xf32>
    %cst_48 = arith.constant -1.000000e+30 : f32
    %99 = vector.broadcast %cst_48 : f32 to vector<16x16xf32>
    %100 = arith.select %69, %98, %99 : vector<16x16xi1>, vector<16x16xf32>
    %cst_49 = arith.constant dense<0xFF800000> : vector<16xf32>
    %101 = vector.multi_reduction <maximumf>, %100, %cst_49 [1] : vector<16x16xf32> to vector<16xf32>
    %102 = vector.shape_cast %101 : vector<16xf32> to vector<16x1xf32>
    %103 = vector.broadcast %102 : vector<16x1xf32> to vector<16x16xf32>
    %104 = arith.subf %100, %103 : vector<16x16xf32>
    %105 = math.exp %104 : vector<16x16xf32>
    %cst_50 = arith.constant dense<0.000000e+00> : vector<16xf32>
    %106 = vector.multi_reduction <add>, %105, %cst_50 [1] : vector<16x16xf32> to vector<16xf32>
    %107 = vector.shape_cast %106 : vector<16xf32> to vector<16x1xf32>
    %108 = arith.truncf %105 : vector<16x16xf32> to vector<16x16xbf16>
    %cst_51 = arith.constant dense<0.000000e+00> : vector<16x16xf32>
    %109 = tpu.matmul %108, %95, %cst_51 {dimension_numbers = #tpu.dot_dimension_numbers<[1], [0], [0], [1], [0, 0, 1, 1], [], []>} : vector<16x16xbf16>, vector<16x16xbf16>, vector<16x16xf32> -> vector<16x16xf32>
    %cst_52 = arith.constant 1.000000e+00 : f32
    %110 = vector.broadcast %cst_52 : f32 to vector<16x1xf32>
    %111 = arith.divf %110, %107 : vector<16x1xf32>
    %112 = vector.broadcast %111 : vector<16x1xf32> to vector<16x16xf32>
    %113 = arith.mulf %109, %112 : vector<16x16xf32>
    %114 = arith.truncf %113 : vector<16x16xf32> to vector<16x16xbf16>
    %c0_53 = arith.constant 0 : index
    %c16_54 = arith.constant 16 : index
    %115 = vector.load %arg13[%c0_53, %c16_54] : memref<16x64xbf16, #tpu.memory_space<vmem>>, vector<16x16xbf16>
    tpu.vector_store %arg13[%c0_53, %c16_54], %114 {strides = array<i32>} : memref<16x64xbf16, #tpu.memory_space<vmem>>, vector<16x16xbf16>,
    %c0_55 = arith.constant 0 : index
    %c32_56 = arith.constant 32 : index
    %116 = vector.load %arg12[%c0_55, %c32_56] : memref<16x128xbf16, #tpu.memory_space<vmem>>, vector<16x16xbf16>
    %c0_57 = arith.constant 0 : index
    %c80_58 = arith.constant 80 : index
    %117 = vector.load %arg12[%c0_57, %c80_58] : memref<16x128xbf16, #tpu.memory_space<vmem>>, vector<16x16xbf16>
    %c0_59 = arith.constant 0 : index
    %c112 = arith.constant 112 : index
    %118 = vector.load %arg12[%c0_59, %c112] : memref<16x128xbf16, #tpu.memory_space<vmem>>, vector<16x16xbf16>
    %cst_60 = arith.constant dense<0.000000e+00> : vector<16x16xf32>
    %119 = tpu.matmul %116, %117, %cst_60 {dimension_numbers = #tpu.dot_dimension_numbers<[1], [1], [0], [0], [0, 0, 1, 0], [], []>} : vector<16x16xbf16>, vector<16x16xbf16>, vector<16x16xf32> -> vector<16x16xf32>
    %cst_61 = arith.constant 2.500000e-01 : f32
    %120 = vector.broadcast %cst_61 : f32 to vector<16x16xf32>
    %121 = arith.mulf %119, %120 : vector<16x16xf32>
    %cst_62 = arith.constant -1.000000e+30 : f32
    %122 = vector.broadcast %cst_62 : f32 to vector<16x16xf32>
    %123 = arith.select %69, %121, %122 : vector<16x16xi1>, vector<16x16xf32>
    %cst_63 = arith.constant dense<0xFF800000> : vector<16xf32>
    %124 = vector.multi_reduction <maximumf>, %123, %cst_63 [1] : vector<16x16xf32> to vector<16xf32>
    %125 = vector.shape_cast %124 : vector<16xf32> to vector<16x1xf32>
    %126 = vector.broadcast %125 : vector<16x1xf32> to vector<16x16xf32>
    %127 = arith.subf %123, %126 : vector<16x16xf32>
    %128 = math.exp %127 : vector<16x16xf32>
    %cst_64 = arith.constant dense<0.000000e+00> : vector<16xf32>
    %129 = vector.multi_reduction <add>, %128, %cst_64 [1] : vector<16x16xf32> to vector<16xf32>
    %130 = vector.shape_cast %129 : vector<16xf32> to vector<16x1xf32>
    %131 = arith.truncf %128 : vector<16x16xf32> to vector<16x16xbf16>
    %cst_65 = arith.constant dense<0.000000e+00> : vector<16x16xf32>
    %132 = tpu.matmul %131, %118, %cst_65 {dimension_numbers = #tpu.dot_dimension_numbers<[1], [0], [0], [1], [0, 0, 1, 1], [], []>} : vector<16x16xbf16>, vector<16x16xbf16>, vector<16x16xf32> -> vector<16x16xf32>
    %cst_66 = arith.constant 1.000000e+00 : f32
    %133 = vector.broadcast %cst_66 : f32 to vector<16x1xf32>
    %134 = arith.divf %133, %130 : vector<16x1xf32>
    %135 = vector.broadcast %134 : vector<16x1xf32> to vector<16x16xf32>
    %136 = arith.mulf %132, %135 : vector<16x16xf32>
    %137 = arith.truncf %136 : vector<16x16xf32> to vector<16x16xbf16>
    %c0_67 = arith.constant 0 : index
    %c32_68 = arith.constant 32 : index
    %138 = vector.load %arg13[%c0_67, %c32_68] : memref<16x64xbf16, #tpu.memory_space<vmem>>, vector<16x16xbf16>
    tpu.vector_store %arg13[%c0_67, %c32_68], %137 {strides = array<i32>} : memref<16x64xbf16, #tpu.memory_space<vmem>>, vector<16x16xbf16>,
    %c0_69 = arith.constant 0 : index
    %c48_70 = arith.constant 48 : index
    %139 = vector.load %arg12[%c0_69, %c48_70] : memref<16x128xbf16, #tpu.memory_space<vmem>>, vector<16x16xbf16>
    %c0_71 = arith.constant 0 : index
    %c80_72 = arith.constant 80 : index
    %140 = vector.load %arg12[%c0_71, %c80_72] : memref<16x128xbf16, #tpu.memory_space<vmem>>, vector<16x16xbf16>
    %c0_73 = arith.constant 0 : index
    %c112_74 = arith.constant 112 : index
    %141 = vector.load %arg12[%c0_73, %c112_74] : memref<16x128xbf16, #tpu.memory_space<vmem>>, vector<16x16xbf16>
    %cst_75 = arith.constant dense<0.000000e+00> : vector<16x16xf32>
    %142 = tpu.matmul %139, %140, %cst_75 {dimension_numbers = #tpu.dot_dimension_numbers<[1], [1], [0], [0], [0, 0, 1, 0], [], []>} : vector<16x16xbf16>, vector<16x16xbf16>, vector<16x16xf32> -> vector<16x16xf32>
    %cst_76 = arith.constant 2.500000e-01 : f32
    %143 = vector.broadcast %cst_76 : f32 to vector<16x16xf32>
    %144 = arith.mulf %142, %143 : vector<16x16xf32>
    %cst_77 = arith.constant -1.000000e+30 : f32
    %145 = vector.broadcast %cst_77 : f32 to vector<16x16xf32>
    %146 = arith.select %69, %144, %145 : vector<16x16xi1>, vector<16x16xf32>
    %cst_78 = arith.constant dense<0xFF800000> : vector<16xf32>
    %147 = vector.multi_reduction <maximumf>, %146, %cst_78 [1] : vector<16x16xf32> to vector<16xf32>
    %148 = vector.shape_cast %147 : vector<16xf32> to vector<16x1xf32>
    %149 = vector.broadcast %148 : vector<16x1xf32> to vector<16x16xf32>
    %150 = arith.subf %146, %149 : vector<16x16xf32>
    %151 = math.exp %150 : vector<16x16xf32>
    %cst_79 = arith.constant dense<0.000000e+00> : vector<16xf32>
    %152 = vector.multi_reduction <add>, %151, %cst_79 [1] : vector<16x16xf32> to vector<16xf32>
    %153 = vector.shape_cast %152 : vector<16xf32> to vector<16x1xf32>
    %154 = arith.truncf %151 : vector<16x16xf32> to vector<16x16xbf16>
    %cst_80 = arith.constant dense<0.000000e+00> : vector<16x16xf32>
    %155 = tpu.matmul %154, %141, %cst_80 {dimension_numbers = #tpu.dot_dimension_numbers<[1], [0], [0], [1], [0, 0, 1, 1], [], []>} : vector<16x16xbf16>, vector<16x16xbf16>, vector<16x16xf32> -> vector<16x16xf32>
    %cst_81 = arith.constant 1.000000e+00 : f32
    %156 = vector.broadcast %cst_81 : f32 to vector<16x1xf32>
    %157 = arith.divf %156, %153 : vector<16x1xf32>
    %158 = vector.broadcast %157 : vector<16x1xf32> to vector<16x16xf32>
    %159 = arith.mulf %155, %158 : vector<16x16xf32>
    %160 = arith.truncf %159 : vector<16x16xf32> to vector<16x16xbf16>
    %c0_82 = arith.constant 0 : index
    %c48_83 = arith.constant 48 : index
    %161 = vector.load %arg13[%c0_82, %c48_83] : memref<16x64xbf16, #tpu.memory_space<vmem>>, vector<16x16xbf16>
    tpu.vector_store %arg13[%c0_82, %c48_83], %160 {strides = array<i32>} : memref<16x64xbf16, #tpu.memory_space<vmem>>, vector<16x16xbf16>,
    %c0_84 = arith.constant 0 : index
    %c0_85 = arith.constant 0 : index
    %162 = vector.load %arg13[%c0_84, %c0_85] : memref<16x64xbf16, #tpu.memory_space<vmem>>, vector<16x64xbf16>
    %c0_86 = arith.constant 0 : index
    %c0_87 = arith.constant 0 : index
    %163 = vector.load %arg5[%c0_86, %c0_87] : memref<64x64xbf16, #tpu.memory_space<vmem>>, vector<64x64xbf16>
    %cst_88 = arith.constant dense<0.000000e+00> : vector<16x64xf32>
    %164 = tpu.matmul %162, %163, %cst_88 {dimension_numbers = #tpu.dot_dimension_numbers<[1], [0], [0], [1], [0, 0, 1, 1], [], []>} : vector<16x64xbf16>, vector<64x64xbf16>, vector<16x64xf32> -> vector<16x64xf32>
    %165 = arith.addf %1, %164 : vector<16x64xf32>
    %c0_89 = arith.constant 0 : index
    %c0_90 = arith.constant 0 : index
    %166 = vector.load %arg10[%c0_89, %c0_90] : memref<1x64xf32, #tpu.memory_space<vmem>>, vector<1x64xf32>
    %167 = arith.mulf %165, %165 : vector<16x64xf32>
    %cst_91 = arith.constant dense<0.000000e+00> : vector<16xf32>
    %168 = vector.multi_reduction <add>, %167, %cst_91 [1] : vector<16x64xf32> to vector<16xf32>
    %169 = vector.shape_cast %168 : vector<16xf32> to vector<16x1xf32>
    %cst_92 = arith.constant 6.400000e+01 : f32
    %170 = vector.broadcast %cst_92 : f32 to vector<16x1xf32>
    %171 = arith.divf %169, %170 : vector<16x1xf32>
    %cst_93 = arith.constant 9.99999974E-6 : f32
    %172 = vector.broadcast %cst_93 : f32 to vector<16x1xf32>
    %173 = arith.addf %171, %172 : vector<16x1xf32>
    %174 = math.rsqrt %173 : vector<16x1xf32>
    %175 = vector.broadcast %174 : vector<16x1xf32> to vector<16x64xf32>
    %176 = arith.mulf %165, %175 : vector<16x64xf32>
    %177 = vector.broadcast %166 : vector<1x64xf32> to vector<16x64xf32>
    %178 = arith.mulf %176, %177 : vector<16x64xf32>
    %179 = arith.truncf %178 : vector<16x64xf32> to vector<16x64xbf16>
    %c0_94 = arith.constant 0 : index
    %c0_95 = arith.constant 0 : index
    %180 = vector.load %arg6[%c0_94, %c0_95] : memref<64x192xbf16, #tpu.memory_space<vmem>>, vector<64x192xbf16>
    %cst_96 = arith.constant dense<0.000000e+00> : vector<16x192xf32>
    %181 = tpu.matmul %179, %180, %cst_96 {dimension_numbers = #tpu.dot_dimension_numbers<[1], [0], [0], [1], [0, 0, 1, 1], [], []>} : vector<16x64xbf16>, vector<64x192xbf16>, vector<16x192xf32> -> vector<16x192xf32>
    %c0_97 = arith.constant 0 : index
    %c0_98 = arith.constant 0 : index
    %182 = vector.load %arg7[%c0_97, %c0_98] : memref<64x192xbf16, #tpu.memory_space<vmem>>, vector<64x192xbf16>
    %cst_99 = arith.constant dense<0.000000e+00> : vector<16x192xf32>
    %183 = tpu.matmul %179, %182, %cst_99 {dimension_numbers = #tpu.dot_dimension_numbers<[1], [0], [0], [1], [0, 0, 1, 1], [], []>} : vector<16x64xbf16>, vector<64x192xbf16>, vector<16x192xf32> -> vector<16x192xf32>
    %184 = arith.negf %181 : vector<16x192xf32>
    %185 = math.exp %184 : vector<16x192xf32>
    %cst_100 = arith.constant 1.000000e+00 : f32
    %186 = vector.broadcast %cst_100 : f32 to vector<16x192xf32>
    %187 = arith.addf %186, %185 : vector<16x192xf32>
    %188 = arith.divf %186, %187 : vector<16x192xf32>
    %189 = arith.mulf %181, %188 : vector<16x192xf32>
    %190 = arith.mulf %189, %183 : vector<16x192xf32>
    %191 = arith.truncf %190 : vector<16x192xf32> to vector<16x192xbf16>
    %c0_101 = arith.constant 0 : index
    %c0_102 = arith.constant 0 : index
    %192 = vector.load %arg8[%c0_101, %c0_102] : memref<192x64xbf16, #tpu.memory_space<vmem>>, vector<192x64xbf16>
    %cst_103 = arith.constant dense<0.000000e+00> : vector<16x64xf32>
    %193 = tpu.matmul %191, %192, %cst_103 {dimension_numbers = #tpu.dot_dimension_numbers<[1], [0], [0], [1], [0, 0, 1, 1], [], []>} : vector<16x192xbf16>, vector<192x64xbf16>, vector<16x64xf32> -> vector<16x64xf32>
    %194 = arith.addf %165, %193 : vector<16x64xf32>
    %c0_104 = arith.constant 0 : index
    %c0_105 = arith.constant 0 : index
    %195 = vector.load %arg11[%c0_104, %c0_105] : memref<16x64xf32, #tpu.memory_space<vmem>>, vector<16x64xf32>
    tpu.vector_store %arg11[%c0_104, %c0_105], %194 {strides = array<i32>} : memref<16x64xf32, #tpu.memory_space<vmem>>, vector<16x64xf32>,
    return
  }
  func.func @transform_0(%arg0: i32) -> (i32, i32) {
    %c0_i32 = arith.constant 0 : i32
    %c0_i32_0 = arith.constant 0 : i32
    return %arg0, %c0_i32 : i32, i32
  }
  func.func @transform_1(%arg0: i32) -> (i32, i32) {
    %c0_i32 = arith.constant 0 : i32
    %c0_i32_0 = arith.constant 0 : i32
    return %arg0, %c0_i32 : i32, i32
  }
  func.func @transform_2(%arg0: i32) -> (i32, i32) {
    %c0_i32 = arith.constant 0 : i32
    %c0_i32_0 = arith.constant 0 : i32
    return %arg0, %c0_i32 : i32, i32
  }
  func.func @transform_3(%arg0: i32) -> (i32, i32) {
    %c0_i32 = arith.constant 0 : i32
    %c0_i32_0 = arith.constant 0 : i32
    %c0_i32_1 = arith.constant 0 : i32
    return %c0_i32, %c0_i32_0 : i32, i32
  }
  func.func @transform_4(%arg0: i32) -> (i32, i32) {
    %c0_i32 = arith.constant 0 : i32
    %c0_i32_0 = arith.constant 0 : i32
    %c0_i32_1 = arith.constant 0 : i32
    return %c0_i32, %c0_i32_0 : i32, i32
  }
  func.func @transform_5(%arg0: i32) -> (i32, i32) {
    %c0_i32 = arith.constant 0 : i32
    %c0_i32_0 = arith.constant 0 : i32
    %c0_i32_1 = arith.constant 0 : i32
    return %c0_i32, %c0_i32_0 : i32, i32
  }
  func.func @transform_6(%arg0: i32) -> (i32, i32) {
    %c0_i32 = arith.constant 0 : i32
    %c0_i32_0 = arith.constant 0 : i32
    %c0_i32_1 = arith.constant 0 : i32
    return %c0_i32, %c0_i32_0 : i32, i32
  }
  func.func @transform_7(%arg0: i32) -> (i32, i32) {
    %c0_i32 = arith.constant 0 : i32
    %c0_i32_0 = arith.constant 0 : i32
    %c0_i32_1 = arith.constant 0 : i32
    return %c0_i32, %c0_i32_0 : i32, i32
  }
  func.func @transform_8(%arg0: i32) -> (i32, i32) {
    %c0_i32 = arith.constant 0 : i32
    %c0_i32_0 = arith.constant 0 : i32
    %c0_i32_1 = arith.constant 0 : i32
    return %c0_i32, %c0_i32_0 : i32, i32
  }
  func.func @transform_9(%arg0: i32) -> (i32, i32) {
    %c0_i32 = arith.constant 0 : i32
    %c0_i32_0 = arith.constant 0 : i32
    %c0_i32_1 = arith.constant 0 : i32
    return %c0_i32, %c0_i32_0 : i32, i32
  }
  func.func @transform_10(%arg0: i32) -> (i32, i32) {
    %c0_i32 = arith.constant 0 : i32
    %c0_i32_0 = arith.constant 0 : i32
    return %arg0, %c0_i32 : i32, i32
  }
}

</mosaic_0001>

<bundles_post_ra>
// kernel: tpu_custom_call.1
= control target key start
LH: loop header
LB: loop body
LE: loop exit
PB: predicated region body
PF: predicated region fallthrough
CT: control target
= control target key end

     0   :  { %15 = vsyncpa [#allocation5], 0  ;;  %s3183_s0 = inlined_call_operand.hbm [shape: bf16[32,64], index: 0, kind: input, shape index: {}]   ;;  %s3184_s1 = inlined_call_operand.vmem [shape: bf16[32,16], index: 1, kind: input, shape index: {}]   ;;  %s3185_s2 = inlined_call_operand.vmem [shape: bf16[32,16], index: 2, kind: input, shape index: {}]   ;;  %s3186_s3 = inlined_call_operand.vmem [shape: bf16[64,128], index: 3, kind: input, shape index: {}]   ;;  %s3187_s4 = inlined_call_operand.hbm [shape: bf16[64,64], index: 4, kind: input, shape index: {}]   ;;  %s3188_s5 = inlined_call_operand.vmem [shape: bf16[64,192], index: 5, kind: input, shape index: {}]   ;;  %s3189_s6 = inlined_call_operand.vmem [shape: bf16[64,192], index: 6, kind: input, shape index: {}]   ;;  %s3190_s7 = inlined_call_operand.vmem [shape: bf16[192,64], index: 7, kind: input, shape index: {}]   ;;  %s3191_s8 = inlined_call_operand.vmem [shape: f32[1,64], index: 8, kind: input, shape index: {}]   ;;  %s3192_s9 = inlined_call_operand.vmem [shape: f32[1,64], index: 9, kind: input, shape index: {}]   ;;  %s3193_s10 = inlined_call_operand.hbm [shape: f32[32,64], index: 10, kind: output, shape index: {}]  }
   0x1   :  { %17 = vsyncpa [#allocation5 + $0x1], 0 }
   0x2   :  { %18 = vsyncpa [#allocation8], 0 }
   0x3   :  { %19 = vsyncpa [#allocation6], 0 }
   0x4   :  { %21 = vsyncpa [#allocation6 + $0x1], 0  ;;  %s2536_s13 = smov 0   ;;  %s2538_s14 = smov 0  }
   0x5   :  { %s2540_s15 = smov 0   ;;  %s2542_s16 = smov 0  }
   0x6 LB: > { %3202 = sst [smem:[#allocation13_spill]] %s2445_s13  ;;  %s2557_s17 = sadd.s32 4294967295, %s2457_s16   ;;  %s2457_s16 = sphi %s2542_s16, %s3221_s16   ;;  %s2453_s15 = sphi %s2540_s15, %s3224_s15   ;;  %s2449_s14 = sphi %s2538_s14, %s3223_s14   ;;  %s2445_s13 = sphi %s2536_s13, %s3222_s13  }
   0x7   : > { %s1936_s18 = sadd.s32 4294967294, %s2457_s16   ;;  %p47_p0 = scmp.ne.s32.totalorder %s2449_s14, %s2445_s13 }
   0x8   : > { %p3196_p1 = scmp.eq.s32.totalorder %s2557_s17, 0  ;;  %p276_p3 = scmp.eq.s32.totalorder %s1936_s18, 1 }
   0x9   : > { %p1937_p5 = scmp.ge.s32.totalorder %s2457_s16, 1  ;;  %p283_p7 = scmp.lt.s32.totalorder %s2457_s16, 3 }
   0xa   : > { %p2566_p4 = por %p3196_p1, %p47_p0  ;;  %p2571_p6 = por %p276_p3, %p47_p0 }
   0xb   : > { %p2576_p8 = pnand %p1937_p5, %p283_p7  ;;  %s2459_s22 = smov [#allocation7]  }
   0xc   : > { %s3203_s19 = scalar_select %p2566_p4, 1, 0 }
   0xd   : > { %s3204_s20 = scalar_select %p2571_p6, 1, 0 }
   0xe   : > { %s3206_s21 = scalar_select %p2576_p8, 1, 0 }
   0xf   : > { %3205 = sst [smem:[#allocation14_spill]] %s3204_s20  ;;  %s298_s23 = sshll.u32 %s2459_s22, 4  ;;  %s2580_s23 = int_to_ptr.vmem [resolvable:$true] %s298_s23 }
  0x10   : > { %p2131_p9 = pneg %p2576_p8  ;;  %s2592_s25 = sadd.s32 1, %s2457_s16  }
  0x11   : > { %3208 = sst [smem:[#allocation15_spill]] %s2592_s25  ;;  %s34_s26 = sadd.s32 1, %s2453_s15 }
  0x12   : > { %p2587_p11 = pnand %p2131_p9, %p3196_p1  ;;  %s31_s27 = ssub.s32 %s2457_s16, %s2592_s25 }
  0x13   : > { %s2329_s30 = scalar_lea.hbm %s3187_s4, 512 }
  0x14   : > { %p2330_p12 = scmp.ne.s32.totalorder %s3187_s4, %s2329_s30  ;;  %p2331_p13 = pneg %p2587_p11 }
  0x15   : > { %p2336_p5 = scmp.lt.u32.totalorder %s2329_s30, %s3187_s4 }
  0x16   : > { %p2332_p0 = pnand %p2331_p13, %p2330_p12 }
  0x18   : > { %p2333_p3 = pneg %p2332_p0 }
  0x1a   : > { %p2338_p7 = pnand %p2336_p5, %p2333_p3 }
  0x1c   : > { %2341 = shalt.err (!%p2338_p7)
}
  0x1d   : > { %s2342_s25 = scalar_lea.vmem %s2580_s23, 512  ;;  %p2350_p2 = scmp.lt.s32.totalorder %s2580_s23, %s2580_s23 }
  0x1e   : > { %p2343_p9 = scmp.ne.s32.totalorder %s2580_s23, %s2342_s25  ;;  %p2351_p6 = scmp.lt.s32.totalorder %s2342_s25, %s2342_s25 }
  0x20   : > { %p2345_p10 = pnand %p2343_p9, %p2331_p13  ;;  %p2352_p4 = por %p2351_p6, %p2350_p2 }
  0x22   : > { %p2346_p1 = pneg %p2345_p10 }
  0x24   : > { %p2353_p8 = pnand %p2352_p4, %p2346_p1 }
  0x26   : > { %2356 = shalt.err (!%p2353_p8)
}
  0x27   : > { %s3201_s28 = smov 64   ;;  %s2461_s29 = smov 4  }
  0x28   : > { %2134 = dma.hbm_to_vmem [thread:$0]  (!%p2587_p11), %s3187_s4, 512, %s2580_s23, [#allocation8], %s3201_s28, %s3201_s28, %s2461_s29  }
  0x29   : > { %p32_p1 = scmp.eq.s32.totalorder %s31_s27, 0  ;;  %p41_p2 = scmp.ne.s32.totalorder %s2453_s15, %s2449_s14 }
  0x2a   : > { %p42_p4 = scmp.eq.s32.totalorder %s2457_s16, 0  ;;  %p2144_p6 = scmp.lt.s32.totalorder %s2457_s16, 2 }
  0x2b   : > { %s2626_s11 = scalar_select %p32_p1, %s2453_s15, %s34_s26  }
  0x2c   : > { %p43_p8 = por %p42_p4, %p41_p2  ;;  %p3209_p10 = scmp.eq.s32.totalorder %s2557_s17, 1 }
  0x2d   : > { %s327_s24 = sand.u32 1, %s2453_s15   ;;  %s2011_s18 = sshll.u32 %s2457_s16, 7 }
  0x2e   : > { %p2630_p12 = por %p3209_p10, %p41_p2  ;;  %s1940_s22 = sshll.u32 %s327_s24, 3 }
  0x2f   : > { %s2639_s25 = scalar_lea.hbm %s3183_s0, %s2011_s18  ;;  %s331_s23 = scalar_lea.vmem [#allocation4], %s1940_s22 }
  0x30   : > { %s338_s26 = sshll.u32 %s331_s23, 4  ;;  %p2641_p11 = pnand %p2144_p6, %p43_p8  ;;  %s2645_s26 = int_to_ptr.vmem [resolvable:$true] %s338_s26 }
  0x31   : > { %s2647_s30 = scalar_lea.sflag [#allocation5], %s327_s24  ;;  %s2357_s28 = scalar_lea.hbm %s2639_s25, 128 }
  0x32   : > { %p2358_p13 = scmp.ne.s32.totalorder %s2639_s25, %s2357_s28  ;;  %p2359_p0 = pneg %p2641_p11 }
  0x33   : > { %s2362_s18 = scalar_lea.hbm %s3183_s0, 256  ;;  %p2363_p7 = scmp.lt.u32.totalorder %s2639_s25, %s3183_s0 }
  0x34   : > { %p2360_p3 = pnand %p2359_p0, %p2358_p13  ;;  %p2364_p9 = scmp.lt.u32.totalorder %s2362_s18, %s2357_s28 }
  0x35   : > { %p2366_p2 = scmp.lt.u32.totalorder %s2357_s28, %s2639_s25 }
  0x36   : > { %p2361_p5 = pneg %p2360_p3  ;;  %p2365_p1 = por %p2364_p9, %p2363_p7 }
  0x38   : > { %p2367_p4 = por %p2366_p2, %p2365_p1 }
  0x3a   : > { %p2368_p6 = pnand %p2367_p4, %p2361_p5 }
  0x3c   : > { %2371 = shalt.err (!%p2368_p6)
}
  0x3d   : > { %s2372_s24 = scalar_lea.vmem %s2645_s26, 128  ;;  %s2462_s13 = smov [#allocation4]  }
  0x3e   : > { %p2373_p8 = scmp.ne.s32.totalorder %s2645_s26, %s2372_s24  ;;  %s2377_s20 = sshll.u32 %s2462_s13, 4  ;;  %s2378_s20 = int_to_ptr.vmem [resolvable:$false] %s2377_s20 }
  0x3f   : > { %s2379_s22 = scalar_lea.vmem %s2378_s20, 256  ;;  %p2380_p3 = scmp.lt.s32.totalorder %s2645_s26, %s2378_s20 }
  0x40   : > { %p2375_p10 = pnand %p2373_p8, %p2359_p0  ;;  %p2381_p7 = scmp.lt.s32.totalorder %s2379_s22, %s2372_s24 }
  0x42   : > { %p2376_p13 = pneg %p2375_p10  ;;  %p2382_p9 = por %p2381_p7, %p2380_p3 }
  0x44   : > { %p2383_p1 = pnand %p2382_p9, %p2376_p13 }
  0x46   : > { %2386 = shalt.err (!%p2383_p1)
}
  0x47   : > { %s3212_s28 = smov 64   ;;  %p3213_p0 = scmp.ne.s32.totalorder %s3206_s21, 0 }
  0x48   : > { %2138 = dma.hbm_to_vmem [thread:$0]  (!%p2641_p11), %s2639_s25, 128, %s2645_s26, %s2647_s30, %s3212_s28, %s3212_s28, %s2461_s29  }
  0x49   : > { %368 = sbr.rel (%p3213_p0) target bundleno = 2700 (0xa8c), region = 60  ;;  %s2681_s18 = sand.u32 (!%p3213_p0), 1, %s2449_s14  }
  0x4a   : > { %s1944_s23 = sshll.u32 (!%p3213_p0), %s2681_s18, 3  ;;  %s371_s24 = scalar_lea.sflag (!%p3213_p0), [#allocation5], %s2681_s18 }
  0x4b   : > { %s374_s13 = scalar_lea.vmem (!%p3213_p0), [#allocation4], %s1944_s23  ;;  %p3214_p5 = scmp.ne.s32.totalorder (!%p3213_p0), %s3203_s19, 0 }
  0x50   : > { %2432 = dma.done.wait (%p3214_p5), %s371_s24, 128  }
  0x51   : > { %2434 = vsyncadd (%p3214_p5), %s371_s24, 4294967168  ;;  %p3215_p2 = scmp.eq.s32.totalorder %s2557_s17, 0 }
  0x53   : > { %2436 = dma.done.wait (%p3215_p2), [#allocation8], 512   ;;  %p3216_p11 = pmov %p3215_p2 }
  0x54   : > { %v2014_v0 = vld [vmem:[%s374_s13] sm:$0xff]   ;;  %vm447_vm0 = vcmask 523264   ;;  %v2229_v7 = vld [vmem:[%s3186_s3] sm:$0xff]   ;;  %v2463_v8 = vmov 0.0   ;;  %vm2464_vm1 = vmmov 0   ;;  %v2230_v9 = vld [vmem:[%s3186_s3 + $0x8] sm:$0xff]  }
  0x55   : > { %2438 = vsyncadd (%p3216_p11), [#allocation8], 4294966784  ;;  %v2693_v1 = vunpack.c.l.bf16 %v2014_v0  ;;  %v2695_v2 = vunpack.c.h.bf16 %v2014_v0  ;;  %2051 = vmatprep.subr.bf16.mxu0 %v2463_v8  ;;  %2059 = vmatprep.mubr.msk.bf16.mxu0 %vm2464_vm1, %v2463_v8  ;;  %v2231_v10 = vld [vmem:[%s3186_s3 + $0x10] sm:$0xff]   ;;  %v2232_v11 = vld [vmem:[%s3186_s3 + $0x18] sm:$0xff]   ;;  %s2465_s23 = smov 96   ;;  %s2466_s24 = smov 112  }
  0x56   : > { %2052 = vmatpush3.bf16.msra.mxu0 %v2229_v7  ;;  %2063 = vmatprep.subr.bf16.mxu1 %v2463_v8  ;;  %v1951_v21 = vld [vmem:[%s3191_s8] ss:$0 sm:$0xff]  ;;  %s2467_s13 = smov 80   ;;  %s2468_s19 = smov 48   ;;  %vm558_vm2 = vcmask 1047680   ;;  %vm592_vm3 = vcmask 130048  }
  0x57   : > { %v445_v3 = vmul.f32 %v2693_v1, %v2693_v1  ;;  %v446_v4 = vmul.f32 %v2695_v2, %v2695_v2  ;;  %2053 = vmatprep.subr.bf16.mxu0 %v2463_v8  ;;  %2065 = vmatprep.mubr.msk.bf16.mxu1 %vm2464_vm1, %v2463_v8  ;;  %s2469_s21 = smov 64   ;;  %s2470_s29 = smov 16   ;;  %vm637_vm4 = vcmask 261248   ;;  %vm678_vm5 = vcmask 392448  }
  0x58   : > { %s1947_s25 = sshll.u32 %s2557_s17, 1  ;;  %s2471_s22 = smov 8   ;;  %vm719_vm6 = vcmask 523648   ;;  %vm760_vm7 = vcmask 654848   ;;  %vm801_vm8 = vcmask 786048   ;;  %vm804_vm9 = vcmask 1048320  }
  0x59   : > { %v448_v5 = vsel %vm447_vm0, %v445_v3, 0.0  ;;  %v451_v6 = vsel %vm447_vm0, %v446_v4, 0.0  ;;  %p427_p4 = scmp.lt.s32.totalorder %s1947_s25, 3  ;;  %s2475_s28 = smov 40  }
  0x5a   : > { %449 = vadd.xlane.f32.xlu0 %v448_v5  ;;  %2054 = vmatpush3.bf16.msra.mxu0 %v2230_v9  ;;  %s2476_s27 = smov 56  }
  0x5b   : > { %2055 = vmatprep.subr.bf16.mxu0 %v2463_v8  ;;  %s3226_s25 = smov (!%p427_p4, %s1947_s25), 3 }
  0x5c   : > { %s1948_s26 = sshll.u32 %s3226_s25, 2  ;;  %s2472_s25 = smov 32  }
  0x5d   : > { %s436_s20 = scalar_lea.vmem %s3185_s2, %s1948_s26  ;;  %s430_s30 = scalar_lea.vmem %s3184_s1, %s1948_s26 }
  0x5e   : > { %452 = vadd.xlane.f32.xlu0 %v451_v6  ;;  %2056 = vmatpush3.bf16.msra.mxu0 %v2231_v10  ;;  %v2022_v40 = vld [vmem:[%s436_s20] sm:$0xff]   ;;  %s2473_s26 = smov 120   ;;  %s2474_s20 = smov 24  }
  0x5f   : > { %2057 = vmatprep.subr.bf16.mxu0 %v2463_v8  ;;  %v2023_v43 = vunpack.c.l.bf16 %v2022_v40  ;;  %v2024_v44 = vunpack.c.h.bf16 %v2022_v40  ;;  %v2845_v0 = vld [vmem:[%s430_s30] sm:$0xff]   ;;  %s2477_s30 = smov 72  }
  0x60   : > { %v2019_v4 = vunpack.c.l.bf16 %v2845_v0  ;;  %v2020_v5 = vunpack.c.h.bf16 %v2845_v0 }
  0x61   : > { %v2199_v48 = vpack.i.bf16 %v2024_v44, %v2023_v43 }
  0x62   : > { %2058 = vmatpush3.bf16.msra.mxu0 %v2232_v11  ;;  %v2209_v11 = vpack.i.bf16 %v2020_v5, %v2019_v4 }
  0x63   : > { %2075 = vmatprep.subr.bf16.mxu0 %v2463_v8 }
  0xe7   : > { %v450_v12 = vpop.xlane.xlu0 %449 }
  0xe8   : > { %v455_v13 = vmul.f32 0.015625, %v450_v12 }
  0xea   : > { %v457_v14 = vadd.f32 1e-05, %v455_v13 }
  0xeb   : > { %v453_v15 = vpop.xlane.xlu0 %452 }
  0xec   : > { %2273 = vrsqrt.f32 %v457_v14  ;;  %v456_v16 = vmul.f32 0.015625, %v453_v15 }
  0xee   : > { %v458_v17 = vadd.f32 1e-05, %v456_v16 }
  0xf0   : > { %2275 = vrsqrt.f32 %v458_v17 }
  0xf6   : > { %v2274_v18 = vpop.eup %2273 }
  0xf7   : > { %v461_v19 = vmul.f32 %v2274_v18, %v2693_v1 }
  0xf9   : > { %v469_v23 = vmul.f32 %v1951_v21, %v461_v19 }
  0xfa   : > { %v2276_v20 = vpop.eup %2275 }
  0xfb   : > { %v462_v22 = vmul.f32 %v2276_v20, %v2695_v2 }
  0xfd   : > { %v470_v24 = vmul.f32 %v1951_v21, %v462_v22 }
  0xff   : > { %v471_v25 = vpack.c.bf16 %v470_v24, %v469_v23 }
 0x101   : > { %2060 = vmatmul.mubr.msk.bf16.vlgmr.msra.gmra.mrb[0].mxu0 %vm447_vm0, %v471_v25 }
 0x102   : > { %2077 = vmatprep.mubr.msk.bf16.mxu0 %vm2464_vm1, %v2463_v8 }
 0x1d4   : > { %v2733_v26 = vpop.f32.mrb[0].mxu0 }
 0x1d5   : > { %647 = vrot.lane.b32.xlu0 %v2733_v26, %s2465_s23  ;;  %606 = vrot.lane.b32.xlu1 %v2733_v26, %s2466_s24  ;;  %v2061_v27 = vpop.f32.mrb[1].mxu0 }
 0x1d6   : > { %v2739_v28 = vpop.f32.mrb[2].mxu0 }
 0x1d7   : > { %v2062_v29 = vpop.f32.mrb[3].mxu0  ;;  %v803_v30 = vpack.c.bf16 %v2739_v28, %v2733_v26 }
 0x1d9   : > { %688 = vrot.lane.b32.xlu1 %v2733_v26, %s2467_s13  ;;  %772 = vrot.lane.b32.xlu0 %v2739_v28, %s2468_s19 }
 0x1dd   : > { %729 = vrot.lane.b32.xlu1 %v2733_v26, %s2469_s21  ;;  %562 = vrot.lane.b32.xlu0 %v2739_v28, %s2470_s29 }
 0x1e1   : > { %608 = vrot.lane.b32.xlu1 %v2739_v28, %s2466_s24 }
 0x1e5   : > { %649 = vrot.lane.b32.xlu1 %v2739_v28, %s2465_s23 }
 0x1e9   : > { %690 = vrot.lane.b32.xlu1 %v2739_v28, %s2467_s13 }
 0x1ed   : > { %731 = vrot.lane.b32.xlu1 %v2739_v28, %s2469_s21 }
 0x1f1   : > { %770 = vrot.lane.b32.xlu1 %v2733_v26, %s2468_s19 }
 0x1f5   : > { %559 = vrot.lane.b32.xlu1 %v2733_v26, %s2470_s29 }
 0x247   : > { %v2763_v31 = vpop.permute.xlu1 %606  ;;  %v2767_v32 = vpop.permute.xlu0 %647 }
 0x248   : > { %612 = vrot.lane.b32.xlu1 %v2763_v31, %s2470_s29 }
 0x24b   : > { %v2769_v33 = vpop.permute.xlu1 %688  ;;  %v2794_v38 = vpop.permute.xlu0 %772 }
 0x24c   : > { %653 = vrot.lane.b32.xlu1 %v2767_v32, %s2470_s29 }
 0x24f   : > { %v2773_v34 = vpop.permute.xlu1 %729  ;;  %v563_v42 = vpop.permute.xlu0 %562 }
 0x250   : > { %694 = vrot.lane.b32.xlu1 %v2769_v33, %s2470_s29  ;;  %v564_v46 = vsel %vm558_vm2, %v563_v42, %v2739_v28 }
 0x253   : > { %v2777_v35 = vpop.permute.xlu1 %608 }
 0x254   : > { %735 = vrot.lane.b32.xlu1 %v2773_v34, %s2470_s29  ;;  %615 = vrot.lane.b32.xlu0 %v2777_v35, %s2470_s29 }
 0x257   : > { %v2784_v36 = vpop.permute.xlu1 %649 }
 0x258   : > { %656 = vrot.lane.b32.xlu0 %v2784_v36, %s2470_s29 }
 0x25b   : > { %v2790_v37 = vpop.permute.xlu1 %690 }
 0x25c   : > { %697 = vrot.lane.b32.xlu0 %v2790_v37, %s2470_s29 }
 0x25f   : > { %v2797_v39 = vpop.permute.xlu1 %731 }
 0x260   : > { %738 = vrot.lane.b32.xlu0 %v2797_v39, %s2470_s29 }
 0x263   : > { %v2806_v41 = vpop.permute.xlu1 %770 }
 0x264   : > { %779 = vrot.lane.b32.xlu0 %v2794_v38, %s2470_s29  ;;  %776 = vrot.lane.b32.xlu1 %v2806_v41, %s2470_s29 }
 0x267   : > { %v560_v45 = vpop.permute.xlu1 %559 }
 0x268   : > { %567 = vrot.lane.b32.xlu0 %v564_v46, %s2470_s29  ;;  %v561_v47 = vsel %vm558_vm2, %v560_v45, %v2733_v26 }
 0x269   : > { %565 = vrot.lane.b32.xlu1 %v561_v47, %s2470_s29 }
 0x26d   : > { %2200 = vrot.lane.b32.xlu1 %v2199_v48, %s2471_s22 }
 0x2ba   : > { %v613_v49 = vpop.permute.xlu1 %612 }
 0x2bb   : > { %v614_v50 = vsel %vm558_vm2, %v613_v49, %v2763_v31 }
 0x2bc   : > { %618 = vrot.lane.b32.xlu0 %v614_v50, %s2470_s29 }
 0x2be   : > { %v654_v51 = vpop.permute.xlu1 %653 }
 0x2bf   : > { %v655_v52 = vsel %vm558_vm2, %v654_v51, %v2767_v32 }
 0x2c0   : > { %659 = vrot.lane.b32.xlu0 %v655_v52, %s2470_s29 }
 0x2c2   : > { %v695_v53 = vpop.permute.xlu1 %694 }
 0x2c3   : > { %v696_v54 = vsel %vm558_vm2, %v695_v53, %v2769_v33 }
 0x2c4   : > { %700 = vrot.lane.b32.xlu0 %v696_v54, %s2470_s29 }
 0x2c6   : > { %v616_v55 = vpop.permute.xlu0 %615  ;;  %v736_v56 = vpop.permute.xlu1 %735 }
 0x2c7   : > { %v617_v57 = vsel %vm558_vm2, %v616_v55, %v2777_v35  ;;  %v737_v58 = vsel %vm558_vm2, %v736_v56, %v2773_v34 }
 0x2c8   : > { %620 = vrot.lane.b32.xlu1 %v617_v57, %s2470_s29  ;;  %741 = vrot.lane.b32.xlu0 %v737_v58, %s2470_s29 }
 0x2ca   : > { %v657_v59 = vpop.permute.xlu0 %656 }
 0x2cb   : > { %v658_v60 = vsel %vm558_vm2, %v657_v59, %v2784_v36 }
 0x2cc   : > { %661 = vrot.lane.b32.xlu1 %v658_v60, %s2470_s29 }
 0x2ce   : > { %v698_v61 = vpop.permute.xlu0 %697 }
 0x2cf   : > { %v699_v62 = vsel %vm558_vm2, %v698_v61, %v2790_v37 }
 0x2d0   : > { %702 = vrot.lane.b32.xlu1 %v699_v62, %s2470_s29 }
 0x2d2   : > { %v739_v63 = vpop.permute.xlu0 %738 }
 0x2d3   : > { %v740_v3 = vsel %vm558_vm2, %v739_v63, %v2797_v39 }
 0x2d4   : > { %743 = vrot.lane.b32.xlu1 %v740_v3, %s2470_s29 }
 0x2d6   : > { %v780_v6 = vpop.permute.xlu0 %779  ;;  %v777_v7 = vpop.permute.xlu1 %776 }
 0x2d7   : > { %v781_v9 = vsel %vm558_vm2, %v780_v6, %v2794_v38  ;;  %v778_v10 = vsel %vm558_vm2, %v777_v7, %v2806_v41 }
 0x2d8   : > { %784 = vrot.lane.b32.xlu1 %v781_v9, %s2470_s29  ;;  %782 = vrot.lane.b32.xlu0 %v778_v10, %s2470_s29 }
 0x2da   : > { %v568_v16 = vpop.permute.xlu0 %567 }
 0x2db   : > { %v566_v12 = vpop.permute.xlu1 %565  ;;  %v570_v19 = vsel %vm558_vm2, %v568_v16, %v2739_v28 }
 0x2dc   : > { %2210 = vrot.lane.b32.xlu1 %v2209_v11, %s2472_s25  ;;  %2205 = vrot.lane.b32.xlu0 %v2209_v11, %s2470_s29  ;;  %v569_v15 = vsel %vm558_vm2, %v566_v12, %v2733_v26 }
 0x2df   : > { %v2201_v13 = vpop.permute.xlu1 %2200 }
 0x2e0   : > { %v2202_v14 = vunpack.i.l.bf16 %v2201_v13  ;;  %2220 = vrot.lane.b32.xlu1 %v2209_v11, %s2469_s21  ;;  %2215 = vrot.lane.b32.xlu0 %v2209_v11, %s2468_s19  ;;  %v2203_v17 = vunpack.i.h.bf16 %v2201_v13 }
 0x2e2   : > { %v579_v18 = vmul.f32 %v2202_v14, %v569_v15  ;;  %v580_v20 = vmul.f32 %v2203_v17, %v570_v19 }
 0x2e4   : > { %2225 = vrot.lane.b32.xlu0 %v2209_v11, %s2467_s13  ;;  %583 = vrot.lane.b32.xlu1 %v579_v18, %s2473_s26 }
 0x2e8   : > { %585 = vrot.lane.b32.xlu0 %v580_v20, %s2473_s26  ;;  %v556_v20 = vmul.f32 %v2019_v4, %v2733_v26 }
 0x32e   : > { %v619_v21 = vpop.permute.xlu0 %618 }
 0x32f   : > { %v622_v22 = vsel %vm558_vm2, %v619_v21, %v2763_v31  ;;  %v557_v21 = vmul.f32 %v2020_v5, %v2739_v28 }
 0x330   : > { %v624_v23 = vmul.f32 %v2202_v14, %v622_v22 }
 0x332   : > { %v660_v24 = vpop.permute.xlu0 %659  ;;  %628 = vrot.lane.b32.xlu0 %v624_v23, %s2471_s22 }
 0x333   : > { %v663_v25 = vsel %vm558_vm2, %v660_v24, %v2767_v32 }
 0x334   : > { %v665_v27 = vmul.f32 %v2202_v14, %v663_v25 }
 0x336   : > { %v701_v29 = vpop.permute.xlu0 %700  ;;  %669 = vrot.lane.b32.xlu1 %v665_v27, %s2474_s20 }
 0x337   : > { %v704_v40 = vsel %vm558_vm2, %v701_v29, %v2769_v33 }
 0x338   : > { %v706_v42 = vmul.f32 %v2202_v14, %v704_v40 }
 0x33a   : > { %v742_v43 = vpop.permute.xlu0 %741  ;;  %v621_v44 = vpop.permute.xlu1 %620  ;;  %710 = vrot.lane.b32.xlu0 %v706_v42, %s2475_s28 }
 0x33b   : > { %v745_v31 = vsel %vm558_vm2, %v742_v43, %v2773_v34  ;;  %v623_v46 = vsel %vm558_vm2, %v621_v44, %v2777_v35 }
 0x33c   : > { %v747_v45 = vmul.f32 %v2202_v14, %v745_v31  ;;  %v625_v48 = vmul.f32 %v2203_v17, %v623_v46 }
 0x33e   : > { %v662_v32 = vpop.permute.xlu1 %661  ;;  %751 = vrot.lane.b32.xlu1 %v747_v45, %s2476_s27 }
 0x33f   : > { %v664_v47 = vsel %vm558_vm2, %v662_v32, %v2784_v36 }
 0x340   : > { %v666_v33 = vmul.f32 %v2203_v17, %v664_v47 }
 0x342   : > { %v703_v49 = vpop.permute.xlu1 %702  ;;  %630 = vrot.lane.b32.xlu1 %v625_v48, %s2471_s22  ;;  %671 = vrot.lane.b32.xlu0 %v666_v33, %s2474_s20 }
 0x343   : > { %v705_v50 = vsel %vm558_vm2, %v703_v49, %v2790_v37 }
 0x344   : > { %v707_v34 = vmul.f32 %v2203_v17, %v705_v50 }
 0x346   : > { %v744_v51 = vpop.permute.xlu1 %743  ;;  %712 = vrot.lane.b32.xlu1 %v707_v34, %s2475_s28 }
 0x347   : > { %v746_v35 = vsel %vm558_vm2, %v744_v51, %v2797_v39 }
 0x348   : > { %v748_v52 = vmul.f32 %v2203_v17, %v746_v35 }
 0x34a   : > { %v783_v53 = vpop.permute.xlu0 %782  ;;  %v785_v54 = vpop.permute.xlu1 %784  ;;  %753 = vrot.lane.b32.xlu0 %v748_v52, %s2476_s27  ;;  %s1946_s27 = sshll.u32 %s2681_s18, 4 }
 0x34b   : > { %v786_v36 = vsel %vm558_vm2, %v783_v53, %v2806_v41  ;;  %v787_v55 = vsel %vm558_vm2, %v785_v54, %v2794_v38 }
 0x34c   : > { %v788_v56 = vmul.f32 %v2202_v14, %v786_v36  ;;  %v789_v57 = vmul.f32 %v2203_v17, %v787_v55 }
 0x34e   : > { %v2206_v58 = vpop.permute.xlu0 %2205  ;;  %v2211_v37 = vpop.permute.xlu1 %2210  ;;  %792 = vrot.lane.b32.xlu1 %v788_v56, %s2477_s30  ;;  %794 = vrot.lane.b32.xlu0 %v789_v57, %s2477_s30  ;;  %s424_s30 = scalar_lea.vmem [#allocation9], %s1946_s27 }
 0x34f   : > { %v2208_v59 = vunpack.i.h.bf16 %v2206_v58  ;;  %v2207_v60 = vunpack.i.l.bf16 %v2206_v58  ;;  %v2213_v39 = vunpack.i.h.bf16 %v2211_v37  ;;  %v2212_v61 = vunpack.i.l.bf16 %v2211_v37 }
 0x351   : > { %v602_v62 = vmul.f32 %v2207_v60, %v2733_v26  ;;  %v645_v63 = vmul.f32 %v2212_v61, %v2733_v26  ;;  %v603_v41 = vmul.f32 %v2208_v59, %v2739_v28  ;;  %v646_v3 = vmul.f32 %v2213_v39, %v2739_v28 }
 0x352   : > { %v2216_v38 = vpop.permute.xlu0 %2215  ;;  %v2221_v6 = vpop.permute.xlu1 %2220 }
 0x353   : > { %v2218_v7 = vunpack.i.h.bf16 %v2216_v38  ;;  %v2217_v9 = vunpack.i.l.bf16 %v2216_v38  ;;  %v2223_v10 = vunpack.i.h.bf16 %v2221_v6  ;;  %v2222_v11 = vunpack.i.l.bf16 %v2221_v6 }
 0x355   : > { %v686_v12 = vmul.f32 %v2217_v9, %v2733_v26  ;;  %v727_v13 = vmul.f32 %v2222_v11, %v2733_v26  ;;  %v687_v14 = vmul.f32 %v2218_v7, %v2739_v28  ;;  %v728_v15 = vmul.f32 %v2223_v10, %v2739_v28 }
 0x356   : > { %v2226_v16 = vpop.permute.xlu0 %2225  ;;  %v584_v19 = vpop.permute.xlu1 %583 }
 0x357   : > { %v2228_v17 = vunpack.i.h.bf16 %v2226_v16  ;;  %v2227_v18 = vunpack.i.l.bf16 %v2226_v16  ;;  %v589_v25 = vadd.f32 %v584_v19, %v556_v20 }
 0x359   : > { %v768_v22 = vmul.f32 %v2227_v18, %v2733_v26  ;;  %v769_v23 = vmul.f32 %v2228_v17, %v2739_v28 }
 0x35a   : > { %v586_v24 = vpop.permute.xlu0 %585 }
 0x35b   : > { %v590_v27 = vadd.f32 %v586_v24, %v557_v21 }
 0x35d   : > { %v591_v29 = vpack.c.bf16 %v590_v27, %v589_v25 }
 0x35f   : > { %593 = vst.msk [vmem:[#allocation2] sm:$0xff] %vm592_vm3, %v591_v29 }
 0x3a4   : > { %v629_v40 = vpop.permute.xlu0 %628 }
 0x3a5   : > { %v634_v45 = vadd.f32 %v629_v40, %v602_v62 }
 0x3a8   : > { %v670_v42 = vpop.permute.xlu1 %669 }
 0x3a9   : > { %v675_v0 = vadd.f32 %v670_v42, %v645_v63 }
 0x3ac   : > { %v711_v43 = vpop.permute.xlu0 %710 }
 0x3ad   : > { %v716_v33 = vadd.f32 %v711_v43, %v686_v12 }
 0x3b0   : > { %v752_v44 = vpop.permute.xlu1 %751 }
 0x3b1   : > { %v757_v51 = vadd.f32 %v752_v44, %v727_v13 }
 0x3b4   : > { %v631_v4 = vpop.permute.xlu1 %630  ;;  %v672_v31 = vpop.permute.xlu0 %671 }
 0x3b5   : > { %v635_v5 = vadd.f32 %v631_v4, %v603_v41  ;;  %v676_v46 = vadd.f32 %v672_v31, %v646_v3  ;;  %v806_v3 = vlaneseq }
 0x3b7   : > { %v636_v32 = vpack.c.bf16 %v635_v5, %v634_v45  ;;  %v677_v47 = vpack.c.bf16 %v676_v46, %v675_v0  ;;  %v807_v38 = vshrl.u32 %v806_v3, 7  ;;  %v810_v6 = vand.u32 127, %v806_v3 }
 0x3b8   : > { %v713_v48 = vpop.permute.xlu1 %712 }
 0x3b9   : > { %638 = vst.msk [vmem:[#allocation2] sm:$0xff] %vm637_vm4, %v636_v32  ;;  %v717_v49 = vadd.f32 %v713_v48, %v687_v14  ;;  %v808_v7 = vadd.s32 8, %v807_v38  ;;  %vm811_vm10 = vcmp.le.s32.totalorder %v810_v6, %v807_v38 }
 0x3ba   : > { %679 = vst.msk [vmem:[#allocation2] sm:$0xff] %vm678_vm5, %v677_v47 }
 0x3bb   : > { %v718_v50 = vpack.c.bf16 %v717_v49, %v716_v33  ;;  %vm812_vm11 = vcmp.le.s32.totalorder %v810_v6, %v808_v7 }
 0x3bc   : > { %v754_v34 = vpop.permute.xlu0 %753 }
 0x3bd   : > { %720 = vst.msk [vmem:[#allocation2] sm:$0xff] %vm719_vm6, %v718_v50  ;;  %v758_v35 = vadd.f32 %v754_v34, %v728_v15 }
 0x3bf   : > { %v759_v52 = vpack.c.bf16 %v758_v35, %v757_v51 }
 0x3c0   : > { %v793_v53 = vpop.permute.xlu1 %792  ;;  %v795_v54 = vpop.permute.xlu0 %794 }
 0x3c1   : > { %761 = vst.msk [vmem:[#allocation2] sm:$0xff] %vm760_vm7, %v759_v52  ;;  %v798_v36 = vadd.f32 %v793_v53, %v768_v22  ;;  %v799_v55 = vadd.f32 %v795_v54, %v769_v23 }
 0x3c3   : > { %v800_v56 = vpack.c.bf16 %v799_v55, %v798_v36 }
 0x3c5   : > { %802 = vst.msk [vmem:[#allocation2] sm:$0xff] %vm801_vm8, %v800_v56 }
 0x3c6   : > { %805 = vst.msk [vmem:[#allocation2] sm:$0xff] %vm804_vm9, %v803_v30 }
 0x3cd   : > { %v2916_v57 = vld [vmem:[#allocation2] sm:$0xff] }
 0x3ce   : > { %946 = vrot.lane.b32.xlu0 %v2916_v57, %s2469_s21  ;;  %815 = vrot.lane.b32.xlu1 %v2916_v57, %s2469_s21 }
 0x3d2   : > { %1081 = vrot.lane.b32.xlu0 %v2916_v57, %s2468_s19  ;;  %944 = vrot.lane.b32.xlu1 %v2916_v57, %s2466_s24  ;;  %s2012_s24 = sshll.u32 %s2557_s17, 8  ;;  %s1816_s17 = scalar_lea.sflag [#allocation6], %s2681_s18 }
 0x3d3   : > { %s3137_s21 = scalar_lea.hbm %s3193_s10, %s2012_s24 }
 0x3d6   : > { %1216 = vrot.lane.b32.xlu0 %v2916_v57, %s2468_s19  ;;  %1079 = vrot.lane.b32.xlu1 %v2916_v57, %s2465_s23  ;;  %s1829_s23 = sshll.u32 %s424_s30, 4  ;;  %s3130_s23 = int_to_ptr.vmem [resolvable:$true] %s1829_s23 }
 0x3da   : > { %1214 = vrot.lane.b32.xlu1 %v2916_v57, %s2467_s13 }
 0x3de   : > { %887 = vrot.lane.b32.xlu1 %v2916_v57, %s2472_s25 }
 0x440   : > { %v947_v26 = vpop.permute.xlu0 %946  ;;  %v816_v28 = vpop.permute.xlu1 %815 }
 0x441   : > { %v952_v30 = vsel %vm592_vm3, %v947_v26, 0  ;;  %v821_v58 = vsel %vm592_vm3, %v816_v28, 0 }
 0x442   : > { %2064 = vmatpush3.bf16.xpose.msra.mxu1 %v821_v58  ;;  %2076 = vmatpush3.bf16.xpose.msra.mxu0 %v952_v30 }
 0x443   : > { %2087 = vmatprep.subr.bf16.mxu0 %v2463_v8  ;;  %2069 = vmatprep.subr.bf16.mxu1 %v2463_v8 }
 0x444   : > { %v945_v37 = vpop.permute.xlu1 %944  ;;  %v1082_v59 = vpop.permute.xlu0 %1081 }
 0x445   : > { %v1087_v39 = vsel %vm592_vm3, %v1082_v59, 0 }
 0x448   : > { %v1080_v60 = vpop.permute.xlu1 %1079  ;;  %v1217_v62 = vpop.permute.xlu0 %1216 }
 0x449   : > { %2066 = vmatmul.mubr.msk.bf16.vlgmr.msra.gmra.mrb[0].mxu1 %vm592_vm3, %v2916_v57  ;;  %2078 = vmatmul.mubr.msk.bf16.vlgmr.msra.gmra.mrb[4].mxu0 %vm592_vm3, %v945_v37  ;;  %v1222_v41 = vsel %vm592_vm3, %v1217_v62, 0 }
 0x44a   : > { %2088 = vmatpush3.bf16.xpose.msra.mxu0 %v1087_v39  ;;  %2089 = vmatprep.mubr.msk.bf16.mxu0 %vm2464_vm1, %v2463_v8 }
 0x44b   : > { %2099 = vmatprep.subr.bf16.mxu0 %v2463_v8  ;;  %2071 = vmatprep.mubr.msk.bf16.mxu1 %vm2464_vm1, %v2463_v8 }
 0x44c   : > { %v1215_v61 = vpop.permute.xlu1 %1214 }
 0x450   : > { %v888_v63 = vpop.permute.xlu1 %887 }
 0x451   : > { %2070 = vmatpush3.bf16.msra.mxu1 %v888_v63  ;;  %2090 = vmatmul.mubr.msk.bf16.vlgmr.msra.gmra.mrb[8].mxu0 %vm592_vm3, %v1080_v60 }
 0x452   : > { %2100 = vmatpush3.bf16.xpose.msra.mxu0 %v1222_v41  ;;  %2101 = vmatprep.mubr.msk.bf16.mxu0 %vm2464_vm1, %v2463_v8 }
 0x453   : > { %2081 = vmatprep.subr.bf16.mxu1 %v2463_v8  ;;  %2111 = vmatprep.subr.bf16.mxu0 %v2463_v8 }
 0x459   : > { %2102 = vmatmul.mubr.msk.bf16.vlgmr.msra.gmra.mrb[12].mxu0 %vm592_vm3, %v1215_v61 }
 0x45a   : > { %2119 = vmatprep.mubr.msk.bf16.mxu0 %vm2464_vm1, %v2463_v8 }
 0x51c   : > { %v857_v9 = vpop.f32.mrb[0].mxu1  ;;  %v988_v10 = vpop.f32.mrb[4].mxu0 }
 0x51d   : > { %v864_v11 = vmul.f32 0.25, %v857_v9  ;;  %v995_v12 = vmul.f32 0.25, %v988_v10  ;;  %v2067_v13 = vpop.f32.mrb[1].mxu1  ;;  %v2079_v14 = vpop.f32.mrb[5].mxu0 }
 0x51e   : > { %v860_v15 = vpop.f32.mrb[2].mxu1  ;;  %v991_v16 = vpop.f32.mrb[6].mxu0 }
 0x51f   : > { %v865_v17 = vmul.f32 0.25, %v860_v15  ;;  %v2068_v18 = vpop.f32.mrb[3].mxu1  ;;  %v2080_v19 = vpop.f32.mrb[7].mxu0  ;;  %v866_v20 = vsel %vm811_vm10, %v864_v11, -1e+30  ;;  %v996_v22 = vmul.f32 0.25, %v991_v16 }
 0x520   : > { %v868_v21 = vsel %vm592_vm3, %v866_v20, -inf  ;;  %v997_v24 = vsel %vm811_vm10, %v995_v12, -1e+30 }
 0x521   : > { %869 = vmax.xlane.f32.xlu0 %v868_v21  ;;  %v867_v23 = vsel %vm812_vm11, %v865_v17, -1e+30  ;;  %v999_v29 = vsel %vm592_vm3, %v997_v24, -inf  ;;  %v998_v43 = vsel %vm812_vm11, %v996_v22, -1e+30 }
 0x522   : > { %v871_v25 = vsel %vm592_vm3, %v867_v23, -inf  ;;  %v1002_v0 = vsel %vm592_vm3, %v998_v43, -inf }
 0x523   : > { %872 = vmax.xlane.f32.xlu1 %v871_v25 }
 0x524   : > { %v1123_v27 = vpop.f32.mrb[8].mxu0 }
 0x525   : > { %v1130_v40 = vmul.f32 0.25, %v1123_v27  ;;  %1000 = vmax.xlane.f32.xlu0 %v999_v29  ;;  %v2091_v42 = vpop.f32.mrb[9].mxu0 }
 0x526   : > { %v1126_v44 = vpop.f32.mrb[10].mxu0 }
 0x527   : > { %v1131_v4 = vmul.f32 0.25, %v1126_v44  ;;  %v2092_v31 = vpop.f32.mrb[11].mxu0  ;;  %v1132_v45 = vsel %vm811_vm10, %v1130_v40, -1e+30 }
 0x528   : > { %v1134_v5 = vsel %vm592_vm3, %v1132_v45, -inf }
 0x529   : > { %1003 = vmax.xlane.f32.xlu0 %v1002_v0  ;;  %1135 = vmax.xlane.f32.xlu1 %v1134_v5  ;;  %v1133_v46 = vsel %vm812_vm11, %v1131_v4, -1e+30 }
 0x52a   : > { %v1137_v47 = vsel %vm592_vm3, %v1133_v46, -inf }
 0x52c   : > { %v1258_v32 = vpop.f32.mrb[12].mxu0 }
 0x52d   : > { %v1265_v48 = vmul.f32 0.25, %v1258_v32  ;;  %1138 = vmax.xlane.f32.xlu0 %v1137_v47  ;;  %v2103_v33 = vpop.f32.mrb[13].mxu0 }
 0x52e   : > { %v1261_v49 = vpop.f32.mrb[14].mxu0 }
 0x52f   : > { %v1266_v50 = vmul.f32 0.25, %v1261_v49  ;;  %v2104_v34 = vpop.f32.mrb[15].mxu0  ;;  %v1267_v51 = vsel %vm811_vm10, %v1265_v48, -1e+30 }
 0x530   : > { %v1269_v35 = vsel %vm592_vm3, %v1267_v51, -inf }
 0x531   : > { %1270 = vmax.xlane.f32.xlu1 %v1269_v35  ;;  %v1268_v52 = vsel %vm812_vm11, %v1266_v50, -1e+30 }
 0x532   : > { %v1272_v53 = vsel %vm592_vm3, %v1268_v52, -inf }
 0x533   : > { %1273 = vmax.xlane.f32.xlu0 %v1272_v53 }
 0x542   : > { %1153 = vrot.lane.b32.xlu1 %v2916_v57, %s2470_s29 }
 0x546   : > { %1288 = vrot.lane.b32.xlu1 %v2916_v57, %s2470_s29 }
 0x549   : > { %1018 = vrot.lane.b32.xlu0 %v2916_v57, %s2472_s25 }
 0x5ae   : > { %v870_v54 = vpop.xlane.xlu0 %869 }
 0x5af   : > { %v874_v36 = vsub.f32 %v866_v20, %v870_v54 }
 0x5b0   : > { %v873_v55 = vpop.xlane.xlu1 %872 }
 0x5b1   : > { %v876_v56 = vmul.f32 1.442695, %v874_v36  ;;  %v875_v26 = vsub.f32 %v867_v23, %v873_v55 }
 0x5b2   : > { %v1001_v28 = vpop.xlane.xlu0 %1000 }
 0x5b3   : > { %v878_v30 = vmul.f32 1.442695, %v875_v26  ;;  %v1005_v58 = vsub.f32 %v997_v24, %v1001_v28  ;;  %2277 = vpow2.f32 %v876_v56 }
 0x5b5   : > { %2279 = vpow2.f32 %v878_v30  ;;  %v1007_v37 = vmul.f32 1.442695, %v1005_v58 }
 0x5b6   : > { %v1004_v59 = vpop.xlane.xlu0 %1003  ;;  %v1136_v60 = vpop.xlane.xlu1 %1135 }
 0x5b7   : > { %2281 = vpow2.f32 %v1007_v37  ;;  %v1006_v39 = vsub.f32 %v998_v43, %v1004_v59  ;;  %v1140_v61 = vsub.f32 %v1132_v45, %v1136_v60  ;;  %v2233_v37 = vld [vmem:[#allocation7] sm:$0xff]  }
 0x5b8   : > { %2112 = vmatpush3.bf16.msra.mxu0 %v2233_v37 }
 0x5b9   : > { %v1009_v62 = vmul.f32 1.442695, %v1006_v39  ;;  %v1142_v63 = vmul.f32 1.442695, %v1140_v61  ;;  %v2234_v61 = vld [vmem:[#allocation7 + $0x8] sm:$0xff]   ;;  %2113 = vmatprep.subr.bf16.mxu0 %v2463_v8 }
 0x5ba   : > { %v1139_v41 = vpop.xlane.xlu0 %1138 }
 0x5bb   : > { %2283 = vpow2.f32 %v1009_v62  ;;  %v1141_v57 = vsub.f32 %v1133_v46, %v1139_v41 }
 0x5bc   : > { %2285 = vpow2.f32 %v1142_v63  ;;  %2114 = vmatpush3.bf16.msra.mxu0 %v2234_v61  ;;  %v2254_v61 = vld [vmem:[%s3189_s6 + $0x14] ss:$8 sps:$4 sm:$0xff]  }
 0x5bd   : > { %v1144_v3 = vmul.f32 1.442695, %v1141_v57  ;;  %v2278_v38 = vpop.eup %2277  ;;  %2115 = vmatprep.subr.bf16.mxu0 %v2463_v8 }
 0x5be   : > { %v1271_v6 = vpop.xlane.xlu1 %1270  ;;  %v880_v4 = vsel %vm592_vm3, %v2278_v38, 0.0 }
 0x5bf   : > { %v2280_v7 = vpop.eup %2279  ;;  %2287 = vpow2.f32 %v1144_v3  ;;  %v1275_v9 = vsub.f32 %v1267_v51, %v1271_v6  ;;  %v2235_v6 = vld [vmem:[#allocation7 + $0x10] sm:$0xff]  }
 0x5c0   : > { %v1274_v10 = vpop.xlane.xlu0 %1273  ;;  %v886_v11 = vpack.c.bf16 %v2280_v7, %v2278_v38  ;;  %v883_v31 = vsel %vm592_vm3, %v2280_v7, 0.0  ;;  %2116 = vmatpush3.bf16.msra.mxu0 %v2235_v6  ;;  %v2265_v6 = vld [vmem:[%s3190_s7 + $0x20] sm:$0xff]  }
 0x5c1   : > { %v2282_v12 = vpop.eup %2281  ;;  %v1277_v13 = vmul.f32 1.442695, %v1275_v9  ;;  %v1276_v14 = vsub.f32 %v1268_v52, %v1274_v10  ;;  %2117 = vmatprep.subr.bf16.mxu0 %v2463_v8 }
 0x5c2   : > { %2072 = vmatmul.mubr.msk.bf16.vlgmr.msra.gmra.mrb[4].mxu1 %vm592_vm3, %v886_v11  ;;  %v1011_v15 = vsel %vm592_vm3, %v2282_v12, 0.0  ;;  %v1154_v24 = vpop.permute.xlu1 %1153  ;;  %v2236_v11 = vld [vmem:[#allocation7 + $0x18] sm:$0xff]  }
 0x5c3   : > { %2289 = vpow2.f32 %v1277_v13  ;;  %v1279_v16 = vmul.f32 1.442695, %v1276_v14  ;;  %1012 = vadd.xlane.f32.xlu0 %v1011_v15  ;;  %2083 = vmatprep.mubr.msk.bf16.mxu1 %vm2464_vm1, %v2463_v8 }
 0x5c4   : > { %v1019_v17 = vpop.permute.xlu0 %1018  ;;  %2118 = vmatpush3.bf16.msra.mxu0 %v2236_v11  ;;  %v2269_v11 = vld [vmem:[%s3190_s7 + $0x40] sm:$0xff]  }
 0x5c5   : > { %v2284_v18 = vpop.eup %2283  ;;  %2291 = vpow2.f32 %v1279_v16  ;;  %2082 = vmatpush3.bf16.msra.mxu1 %v1019_v17 }
 0x5c6   : > { %v2286_v19 = vpop.eup %2285  ;;  %v1014_v20 = vsel %vm592_vm3, %v2284_v18, 0.0  ;;  %2093 = vmatprep.subr.bf16.mxu1 %v2463_v8  ;;  %v1017_v22 = vpack.c.bf16 %v2284_v18, %v2282_v12  ;;  %v1289_v44 = vpop.permute.xlu1 %1288 }
 0x5c7   : > { %1015 = vadd.xlane.f32.xlu1 %v1014_v20  ;;  %v1146_v21 = vsel %vm592_vm3, %v2286_v19, 0.0 }
 0x5c8   : > { %1147 = vadd.xlane.f32.xlu0 %v1146_v21 }
 0x5c9   : > { %v2288_v23 = vpop.eup %2287 }
 0x5ca   : > { %2084 = vmatmul.mubr.msk.bf16.vlgmr.msra.gmra.mrb[8].mxu1 %vm592_vm3, %v1017_v22  ;;  %v1149_v25 = vsel %vm592_vm3, %v2288_v23, 0.0  ;;  %v1152_v43 = vpack.c.bf16 %v2288_v23, %v2286_v19 }
 0x5cb   : > { %2094 = vmatpush3.bf16.msra.mxu1 %v1154_v24  ;;  %2095 = vmatprep.mubr.msk.bf16.mxu1 %vm2464_vm1, %v2463_v8 }
 0x5cc   : > { %1150 = vadd.xlane.f32.xlu0 %v1149_v25  ;;  %2105 = vmatprep.subr.bf16.mxu1 %v2463_v8 }
 0x5cd   : > { %v2290_v27 = vpop.eup %2289 }
 0x5ce   : > { %v1281_v29 = vsel %vm592_vm3, %v2290_v27, 0.0 }
 0x5cf   : > { %v2292_v40 = vpop.eup %2291  ;;  %1282 = vadd.xlane.f32.xlu1 %v1281_v29 }
 0x5d0   : > { %v1284_v42 = vsel %vm592_vm3, %v2292_v40, 0.0  ;;  %v1287_v45 = vpack.c.bf16 %v2292_v40, %v2290_v27 }
 0x5d1   : > { %1285 = vadd.xlane.f32.xlu0 %v1284_v42 }
 0x5d2   : > { %2096 = vmatmul.mubr.msk.bf16.vlgmr.msra.gmra.mrb[12].mxu1 %vm592_vm3, %v1152_v43 }
 0x5d3   : > { %2106 = vmatpush3.bf16.msra.mxu1 %v1289_v44  ;;  %881 = vadd.xlane.f32.xlu1 %v880_v4 }
 0x5d4   : > { %2107 = vmatprep.mubr.msk.bf16.mxu1 %vm2464_vm1, %v2463_v8 }
 0x5d5   : > { %884 = vadd.xlane.f32.xlu0 %v883_v31 }
 0x5da   : > { %2108 = vmatmul.mubr.msk.bf16.vlgmr.msra.gmra.mrb[16].mxu1 %vm592_vm3, %v1287_v45 }
 0x650   : > { %v1013_v0 = vpop.xlane.xlu0 %1012 }
 0x654   : > { %v1016_v46 = vpop.xlane.xlu1 %1015 }
 0x655   : > { %v1148_v5 = vpop.xlane.xlu0 %1147 }
 0x659   : > { %v1151_v32 = vpop.xlane.xlu0 %1150 }
 0x65c   : > { %v1283_v47 = vpop.xlane.xlu1 %1282 }
 0x65e   : > { %v1286_v48 = vpop.xlane.xlu0 %1285 }
 0x660   : > { %v882_v33 = vpop.xlane.xlu1 %881 }
 0x661   : > { %2293 = vrcp.f32 %v882_v33  ;;  %v2251_v33 = vld [vmem:[%s3189_s6 + $0x4] ss:$8 sps:$4 sm:$0xff]  }
 0x662   : > { %v885_v49 = vpop.xlane.xlu0 %884 }
 0x663   : > { %2295 = vrcp.f32 %v885_v49  ;;  %v2478_v49 = vmov 0  }
 0x664   : > { %2297 = vrcp.f32 %v1013_v0  ;;  %v2242_v0 = vld [vmem:[%s3188_s5 + $0x14] ss:$8 sps:$4 sm:$0xff]   ;;  %1770 = vmatprep.subr.bf16.mxu1 %v2478_v49 }
 0x665   : > { %2299 = vrcp.f32 %v1016_v46  ;;  %v2245_v46 = vld [vmem:[%s3188_s5 + $0x24] ss:$8 sps:$4 sm:$0xff]  }
 0x666   : > { %2301 = vrcp.f32 %v1148_v5  ;;  %v2240_v5 = vld [vmem:[%s3188_s5 + $0x10] ss:$8 sps:$4 sm:$0xff]  }
 0x667   : > { %2303 = vrcp.f32 %v1151_v32  ;;  %v2243_v32 = vld [vmem:[%s3188_s5 + $0x20] ss:$8 sps:$4 sm:$0xff]  }
 0x668   : > { %2305 = vrcp.f32 %v1283_v47  ;;  %v2248_v47 = vld [vmem:[%s3188_s5 + $0x34] ss:$8 sps:$4 sm:$0xff]  }
 0x669   : > { %2307 = vrcp.f32 %v1286_v48  ;;  %v2246_v48 = vld [vmem:[%s3188_s5 + $0x30] ss:$8 sps:$4 sm:$0xff]  }
 0x66b   : > { %v2294_v34 = vpop.eup %2293 }
 0x66d   : > { %v2296_v35 = vpop.eup %2295 }
 0x66e   : > { %v2298_v26 = vpop.eup %2297 }
 0x66f   : > { %v2300_v30 = vpop.eup %2299 }
 0x670   : > { %v2302_v41 = vpop.eup %2301 }
 0x671   : > { %v2304_v3 = vpop.eup %2303 }
 0x672   : > { %v2306_v14 = vpop.eup %2305 }
 0x673   : > { %v2308_v16 = vpop.eup %2307 }
 0x695   : > { %v927_v50 = vpop.f32.mrb[4].mxu1 }
 0x696   : > { %v2073_v51 = vpop.f32.mrb[5].mxu1  ;;  %v938_v53 = vmul.f32 %v2294_v34, %v927_v50  ;;  %v2261_v50 = vld [vmem:[%s3190_s7] sm:$0xff]   ;;  %v2262_v34 = vld [vmem:[%s3190_s7 + $0x8] sm:$0xff]  }
 0x697   : > { %v930_v52 = vpop.f32.mrb[6].mxu1  ;;  %1771 = vmatpush1.bf16.msra.mxu1 %v2261_v50  ;;  %v2263_v51 = vld [vmem:[%s3190_s7 + $0x10] sm:$0xff]  }
 0x698   : > { %v939_v54 = vmul.f32 %v2296_v35, %v930_v52  ;;  %v2074_v36 = vpop.f32.mrb[7].mxu1  ;;  %1772 = vmatprep.subr.bf16.mxu1 %v2478_v49 }
 0x69a   : > { %v940_v55 = vpack.c.bf16 %v939_v54, %v938_v53 }
 0x69b   : > { %1773 = vmatpush1.bf16.msra.mxu1 %v2262_v34 }
 0x69c   : > { %941 = vst.msk [vmem:[#allocation3] sm:$0xff] %vm592_vm3, %v940_v55  ;;  %1774 = vmatprep.subr.bf16.mxu1 %v2478_v49 }
 0x69d   : > { %v1058_v56 = vpop.f32.mrb[8].mxu1 }
 0x69e   : > { %v2085_v28 = vpop.f32.mrb[9].mxu1  ;;  %v1069_v59 = vmul.f32 %v2298_v26, %v1058_v56 }
 0x69f   : > { %v1061_v58 = vpop.f32.mrb[10].mxu1  ;;  %1775 = vmatpush1.bf16.msra.mxu1 %v2263_v51 }
 0x6a0   : > { %v1070_v60 = vmul.f32 %v2300_v30, %v1061_v58  ;;  %v2086_v39 = vpop.f32.mrb[11].mxu1  ;;  %1776 = vmatprep.subr.bf16.mxu1 %v2478_v49  ;;  %v1970_v30 = vld [vmem:[%s3192_s9] ss:$0 sm:$0xff] }
 0x6a2   : > { %v1071_v62 = vpack.c.bf16 %v1070_v60, %v1069_v59  ;;  %v2249_v60 = vld [vmem:[%s3189_s6] ss:$8 sps:$4 sm:$0xff]  }
 0x6a4   : > { %1073 = vrot.lane.b32.xlu1 %v1071_v62, %s2470_s29  ;;  %v2252_v62 = vld [vmem:[%s3189_s6 + $0x10] ss:$8 sps:$4 sm:$0xff]   ;;  %s2387_s29 = scalar_lea.vmem %s3130_s23, 256 }
 0x6a5   : > { %v1193_v63 = vpop.f32.mrb[12].mxu1  ;;  %p2388_p6 = scmp.ne.s32.totalorder %s3130_s23, %s2387_s29 }
 0x6a6   : > { %v2097_v57 = vpop.f32.mrb[13].mxu1  ;;  %v1204_v7 = vmul.f32 %v2302_v41, %v1193_v63  ;;  %v2257_v63 = vld [vmem:[%s3189_s6 + $0x24] ss:$8 sps:$4 sm:$0xff]   ;;  %v2255_v41 = vld [vmem:[%s3189_s6 + $0x20] ss:$8 sps:$4 sm:$0xff]  }
 0x6a7   : > { %v1196_v38 = vpop.f32.mrb[14].mxu1  ;;  %v2260_v57 = vld [vmem:[%s3189_s6 + $0x34] ss:$8 sps:$4 sm:$0xff]   ;;  %p2389_p8 = pnand %p2388_p6, %p2630_p12 }
 0x6a8   : > { %v1205_v9 = vmul.f32 %v2304_v3, %v1196_v38  ;;  %v2098_v10 = vpop.f32.mrb[15].mxu1  ;;  %v2258_v3 = vld [vmem:[%s3189_s6 + $0x30] ss:$8 sps:$4 sm:$0xff]  }
 0x6a9   : > { %v2264_v38 = vld [vmem:[%s3190_s7 + $0x18] sm:$0xff]   ;;  %p2390_p10 = pneg %p2389_p8 }
 0x6aa   : > { %v1206_v12 = vpack.c.bf16 %v1205_v9, %v1204_v7  ;;  %1777 = vmatpush1.bf16.msra.mxu1 %v2264_v38  ;;  %v2266_v7 = vld [vmem:[%s3190_s7 + $0x28] sm:$0xff]   ;;  %v2267_v9 = vld [vmem:[%s3190_s7 + $0x30] sm:$0xff]   ;;  %v2268_v10 = vld [vmem:[%s3190_s7 + $0x38] sm:$0xff]  }
 0x6ab   : > { %1778 = vmatprep.subr.bf16.mxu1 %v2478_v49 }
 0x6ac   : > { %1208 = vrot.lane.b32.xlu0 %v1206_v12, %s2472_s25  ;;  %v2270_v12 = vld [vmem:[%s3190_s7 + $0x48] sm:$0xff]   ;;  %s2479_s25 = smov [#allocation9]  }
 0x6ad   : > { %v1328_v13 = vpop.f32.mrb[16].mxu1  ;;  %s2391_s26 = sshll.u32 %s2479_s25, 4  ;;  %s2392_s26 = int_to_ptr.vmem [resolvable:$false] %s2391_s26 }
 0x6ae   : > { %v2109_v15 = vpop.f32.mrb[17].mxu1  ;;  %v1339_v18 = vmul.f32 %v2306_v14, %v1328_v13  ;;  %1779 = vmatpush1.bf16.msra.mxu1 %v2265_v6  ;;  %v2271_v13 = vld [vmem:[%s3190_s7 + $0x50] sm:$0xff]   ;;  %v2272_v14 = vld [vmem:[%s3190_s7 + $0x58] sm:$0xff]   ;;  %s2393_s20 = scalar_lea.vmem %s2392_s26, 512  ;;  %p2394_p13 = scmp.lt.s32.totalorder %s3130_s23, %s2392_s26 }
 0x6af   : > { %v1331_v17 = vpop.f32.mrb[18].mxu1  ;;  %1780 = vmatprep.subr.bf16.mxu1 %v2478_v49  ;;  %p2395_p3 = scmp.lt.s32.totalorder %s2393_s20, %s2387_s29 }
 0x6b0   : > { %v1340_v19 = vmul.f32 %v2308_v16, %v1331_v17  ;;  %v2110_v20 = vpop.f32.mrb[19].mxu1 }
 0x6b1   : > { %p2396_p7 = por %p2395_p3, %p2394_p13 }
 0x6b2   : > { %v1341_v21 = vpack.c.bf16 %v1340_v19, %v1339_v18  ;;  %1781 = vmatpush1.bf16.msra.mxu1 %v2266_v7 }
 0x6b3   : > { %1782 = vmatprep.subr.bf16.mxu1 %v2478_v49  ;;  %p2397_p9 = pnand %p2396_p7, %p2390_p10 }
 0x6b4   : > { %1343 = vrot.lane.b32.xlu1 %v1341_v21, %s2468_s19 }
 0x6b6   : > { %1783 = vmatpush1.bf16.msra.mxu1 %v2267_v9 }
 0x6b7   : > { %1784 = vmatprep.subr.bf16.mxu1 %v2478_v49 }
 0x6ba   : > { %1785 = vmatpush1.bf16.msra.mxu1 %v2268_v10 }
 0x6bb   : > { %1786 = vmatprep.subr.bf16.mxu1 %v2478_v49 }
 0x6be   : > { %1787 = vmatpush1.bf16.msra.mxu1 %v2269_v11 }
 0x6bf   : > { %1788 = vmatprep.subr.bf16.mxu1 %v2478_v49 }
 0x6c2   : > { %1789 = vmatpush1.bf16.msra.mxu1 %v2270_v12 }
 0x6c3   : > { %1790 = vmatprep.subr.bf16.mxu1 %v2478_v49 }
 0x6c6   : > { %1791 = vmatpush1.bf16.msra.mxu1 %v2271_v13 }
 0x6c7   : > { %1792 = vmatprep.subr.bf16.mxu1 %v2478_v49 }
 0x6ca   : > { %1793 = vmatpush1.bf16.msra.mxu1 %v2272_v14 }
 0x716   : > { %v1074_v22 = vpop.permute.xlu1 %1073 }
 0x717   : > { %1076 = vst.msk [vmem:[#allocation3] sm:$0xff] %vm637_vm4, %v1074_v22 }
 0x71e   : > { %v1209_v23 = vpop.permute.xlu0 %1208 }
 0x71f   : > { %1211 = vst.msk [vmem:[#allocation3] sm:$0xff] %vm678_vm5, %v1209_v23 }
 0x726   : > { %v1344_v8 = vpop.permute.xlu1 %1343 }
 0x727   : > { %1346 = vst.msk [vmem:[#allocation3] sm:$0xff] %vm719_vm6, %v1344_v8 }
 0x72e   : > { %v1347_v24 = vld [vmem:[#allocation3] sm:$0xff] }
 0x72f   : > { %2120 = vmatmul.mubr.msk.bf16.vlgmr.msra.gmra.mrb[16].mxu0 %vm447_vm0, %v1347_v24 }
 0x730   : > { %1535 = vmatprep.mubr.bf16.mxu0 %v2478_v49 }
 0x802   : > { %v1417_v25 = vpop.f32.mrb[16].mxu0 }
 0x803   : > { %v3010_v27 = vadd.f32 %v2693_v1, %v1417_v25  ;;  %v2121_v29 = vpop.f32.mrb[17].mxu0  ;;  %v2239_v1 = vld [vmem:[%s3188_s5 + $0x4] ss:$8 sps:$4 sm:$0xff]  }
 0x804   : > { %v1420_v40 = vpop.f32.mrb[18].mxu0  ;;  %1503 = vmatprep.subr.bf16.mxu0 %v2239_v1 }
 0x805   : > { %v3013_v42 = vadd.f32 %v2695_v2, %v1420_v40  ;;  %v2122_v43 = vpop.f32.mrb[19].mxu0  ;;  %v1427_v44 = vmul.f32 %v3010_v27, %v3010_v27  ;;  %v2237_v2 = vld [vmem:[%s3188_s5] ss:$8 sps:$4 sm:$0xff]  }
 0x806   : > { %1504 = vmatpush1.bf16.msra.mxu0 %v2237_v2 }
 0x807   : > { %v1429_v4 = vsel %vm447_vm0, %v1427_v44, 0.0  ;;  %v1428_v31 = vmul.f32 %v3013_v42, %v3013_v42  ;;  %1505 = vmatprep.subr.bf16.mxu0 %v2242_v0 }
 0x808   : > { %1430 = vadd.xlane.f32.xlu1 %v1429_v4 }
 0x809   : > { %v1432_v45 = vsel %vm447_vm0, %v1428_v31, 0.0 }
 0x80a   : > { %1433 = vadd.xlane.f32.xlu0 %v1432_v45  ;;  %1506 = vmatpush1.bf16.msra.mxu0 %v2240_v5 }
 0x80b   : > { %1507 = vmatprep.subr.bf16.mxu0 %v2245_v46 }
 0x80e   : > { %1508 = vmatpush1.bf16.msra.mxu0 %v2243_v32 }
 0x80f   : > { %1509 = vmatprep.subr.bf16.mxu0 %v2248_v47 }
 0x812   : > { %1510 = vmatpush1.bf16.msra.mxu0 %v2246_v48 }
 0x813   : > { %1594 = vmatprep.subr.bf16.mxu0 %v2251_v33 }
 0x895   : > { %v1431_v35 = vpop.xlane.xlu1 %1430 }
 0x896   : > { %v1435_v52 = vmul.f32 0.015625, %v1431_v35 }
 0x897   : > { %v1434_v53 = vpop.xlane.xlu0 %1433 }
 0x898   : > { %v1437_v54 = vadd.f32 1e-05, %v1435_v52  ;;  %v1436_v36 = vmul.f32 0.015625, %v1434_v53 }
 0x89a   : > { %2309 = vrsqrt.f32 %v1437_v54  ;;  %v1438_v55 = vadd.f32 1e-05, %v1436_v36 }
 0x89c   : > { %2311 = vrsqrt.f32 %v1438_v55 }
 0x8a4   : > { %v2310_v56 = vpop.eup %2309 }
 0x8a5   : > { %v1441_v26 = vmul.f32 %v2310_v56, %v3010_v27 }
 0x8a6   : > { %v2312_v28 = vpop.eup %2311 }
 0x8a7   : > { %v1442_v58 = vmul.f32 %v2312_v28, %v3013_v42  ;;  %v1449_v37 = vmul.f32 %v1970_v30, %v1441_v26 }
 0x8a9   : > { %v1450_v59 = vmul.f32 %v1970_v30, %v1442_v58 }
 0x8ab   : > { %v1451_v39 = vpack.c.bf16 %v1450_v59, %v1449_v37 }
 0x8ad   : > { %1979 = vmatmul.mubr.msk.bf16.vlgmr.msra.gmra.mrb[20].mxu0 %vm447_vm0, %v1451_v39 }
 0x8ae   : > { %1595 = vmatpush1.bf16.msra.mxu0 %v2249_v60  ;;  %1626 = vmatprep.mubr.bf16.mxu0 %v2478_v49 }
 0x8af   : > { %1596 = vmatprep.subr.bf16.mxu0 %v2254_v61 }
 0x8b2   : > { %1597 = vmatpush1.bf16.msra.mxu0 %v2252_v62 }
 0x8b3   : > { %1598 = vmatprep.subr.bf16.mxu0 %v2257_v63 }
 0x8b6   : > { %1599 = vmatpush1.bf16.msra.mxu0 %v2255_v41 }
 0x8b7   : > { %1600 = vmatprep.subr.bf16.mxu0 %v2260_v57 }
 0x8ba   : > { %1601 = vmatpush1.bf16.msra.mxu0 %v2258_v3 }
 0x8bd   : > { %1988 = vmatmul.mubr.msk.bf16.vlgmr.msra.gmra.mrb[24].mxu0 %vm447_vm0, %v1451_v39 }
 0x980   : > { %v1537_v15 = vpop.f32.mrb[20].mxu0 }
 0x981   : > { %v1989_v16 = vmul.f32 -1.442695, %v1537_v15  ;;  %v1539_v17 = vpop.f32.mrb[21].mxu0 }
 0x982   : > { %v1990_v18 = vmul.f32 -1.442695, %v1539_v17  ;;  %v1541_v19 = vpop.f32.mrb[22].mxu0 }
 0x983   : > { %2313 = vpow2.f32 %v1989_v16  ;;  %v1991_v20 = vmul.f32 -1.442695, %v1541_v19  ;;  %v1543_v21 = vpop.f32.mrb[23].mxu0 }
 0x984   : > { %2315 = vpow2.f32 %v1990_v18  ;;  %v1992_v22 = vmul.f32 -1.442695, %v1543_v21 }
 0x985   : > { %2317 = vpow2.f32 %v1991_v20 }
 0x986   : > { %2319 = vpow2.f32 %v1992_v22 }
 0x98d   : > { %v2314_v23 = vpop.eup %2313 }
 0x98e   : > { %v2316_v8 = vpop.eup %2315  ;;  %v1649_v24 = vadd.f32 1.0, %v2314_v23 }
 0x98f   : > { %v2318_v25 = vpop.eup %2317  ;;  %v1650_v29 = vadd.f32 1.0, %v2316_v8 }
 0x990   : > { %v2320_v40 = vpop.eup %2319  ;;  %2321 = vrcp.f32 %v1649_v24  ;;  %v1651_v43 = vadd.f32 1.0, %v2318_v25  ;;  %v1628_v44 = vpop.f32.mrb[24].mxu0 }
 0x991   : > { %2323 = vrcp.f32 %v1650_v29  ;;  %v1652_v4 = vadd.f32 1.0, %v2320_v40  ;;  %v1630_v31 = vpop.f32.mrb[25].mxu0 }
 0x992   : > { %2325 = vrcp.f32 %v1651_v43  ;;  %v1632_v45 = vpop.f32.mrb[26].mxu0 }
 0x993   : > { %2327 = vrcp.f32 %v1652_v4  ;;  %v1634_v1 = vpop.f32.mrb[27].mxu0 }
 0x99a   : > { %v2322_v2 = vpop.eup %2321 }
 0x99b   : > { %v2324_v0 = vpop.eup %2323  ;;  %v1661_v5 = vmul.f32 %v2322_v2, %v1537_v15 }
 0x99c   : > { %v2326_v46 = vpop.eup %2325  ;;  %v1662_v32 = vmul.f32 %v2324_v0, %v1539_v17 }
 0x99d   : > { %v2328_v47 = vpop.eup %2327  ;;  %v1663_v48 = vmul.f32 %v2326_v46, %v1541_v19  ;;  %v1665_v33 = vmul.f32 %v1661_v5, %v1628_v44 }
 0x99e   : > { %v1664_v49 = vmul.f32 %v2328_v47, %v1543_v21  ;;  %v1666_v50 = vmul.f32 %v1662_v32, %v1630_v31 }
 0x99f   : > { %v1667_v34 = vmul.f32 %v1663_v48, %v1632_v45 }
 0x9a0   : > { %v1668_v51 = vmul.f32 %v1664_v49, %v1634_v1 }
 0x9a1   : > { %v1669_v35 = vpack.c.bf16 %v1667_v34, %v1665_v33 }
 0x9a2   : > { %v1670_v52 = vpack.c.bf16 %v1668_v51, %v1666_v50 }
 0x9a4   : > { %2005 = vmatprep.mubr.msk.bf16.mxu1 %vm447_vm0, %v1670_v52 }
 0x9a5   : > { %1803 = vmatmul.mubr.bf16.vlgmr.msra.gmra.mrb[20].mxu1 %v1669_v35 }
 0xa78   : > { %v1804_v53 = vpop.f32.mrb[20].mxu1 }
 0xa79   : > { %v1811_v54 = vadd.f32 %v1804_v53, %v3010_v27  ;;  %v1806_v36 = vpop.f32.mrb[21].mxu1 }
 0xa7a   : > { %v1807_v55 = vpop.f32.mrb[22].mxu1 }
 0xa7b   : > { %1813 = vst.msk [vmem:[%s424_s30] sm:$0xff] %vm447_vm0, %v1811_v54  ;;  %v1812_v56 = vadd.f32 %v1807_v55, %v3013_v42  ;;  %v1809_v26 = vpop.f32.mrb[23].mxu1 }
 0xa7d   : > { %1814 = vst.msk [vmem:[%s424_s30 + $0x8] sm:$0xff] %vm447_vm0, %v1812_v56 }
 0xa7e   : > { %2400 = shalt.err (!%p2397_p9)
}
 0xa7f   : > { %s2401_s28 = scalar_lea.hbm %s3137_s21, 256  ;;  %s2405_s24 = scalar_lea.hbm %s3193_s10, 512 }
 0xa80   : > { %p2402_p1 = scmp.ne.s32.totalorder %s3137_s21, %s2401_s28  ;;  %p2406_p2 = scmp.lt.u32.totalorder %s3137_s21, %s3193_s10 }
 0xa81   : > { %p2407_p11 = scmp.lt.u32.totalorder %s2405_s24, %s2401_s28  ;;  %p2409_p6 = scmp.lt.u32.totalorder %s2401_s28, %s3137_s21 }
 0xa82   : > { %p2403_p0 = pnand %p2402_p1, %p2630_p12 }
 0xa83   : > { %p2408_p4 = por %p2407_p11, %p2406_p2 }
 0xa84   : > { %p2404_p5 = pneg %p2403_p0 }
 0xa85   : > { %p2410_p8 = por %p2409_p6, %p2408_p4 }
 0xa87   : > { %p2411_p10 = pnand %p2410_p8, %p2404_p5 }
 0xa89   : > { %2414 = shalt.err (!%p2411_p10)
}
 0xa8a   : > { %s2480_s29 = smov 128  }
 0xa8b   : > { %2129 = dma.vmem_to_hbm [thread:$0]  (%p2630_p12), %s3130_s23, 256, %s3137_s21, %s1816_s17, %s2480_s29, %s2480_s29, %s2471_s22  }
 0xa8c PF: > { %s3217_s25 = sld [smem:[#allocation13_spill]]  ;;  %s3218_s26 = sld [smem:[#allocation14_spill]] }
 0xa8d   : > { %p3220_p3 = scmp.ge.s32.totalorder %s2457_s16, 2 }
 0xa92   : > { %s1844_s20 = sand.u32 1, %s3217_s25   ;;  %p3219_p13 = scmp.ne.s32.totalorder %s3218_s26, 0 }
 0xa93   : > { %s1845_s28 = scalar_lea.sflag [#allocation6], %s1844_s20 }
 0xa94   : > { %p2140_p7 = pnand %p3220_p3, %p3219_p13 }
 0xa96   : > { %2440 = dma.done.wait (!%p2140_p7), %s1845_s28, 256  }
 0xa97   : > { %2442 = vsyncadd (!%p2140_p7), %s1845_s28, 4294967040  ;;  %s3221_s16 = sld [smem:[#allocation15_spill]]  ;;  %s3222_s13 = smov %s2449_s14 }
 0xa98   : > { %s3223_s14 = smov %s2453_s15  ;;  %s3224_s15 = smov %s2626_s11 }
 0xa9d   : > { %p24_p9 = scmp.ge.s32.totalorder %s3221_s16, 4  }
 0xa9f   :  { %26 = sbr.rel (!%p24_p9) target bundleno = 6 (0x6), region = 115 }
 0xaa6   :  { %1850 = vsyncpa [#allocation5], 1 }
 0xaa7   :  { %1852 = vsyncpa [#allocation5 + $0x1], 1 }
 0xaa8   :  { %1853 = vsyncpa [#allocation8], 1 }
 0xaa9   :  { %1854 = vsyncpa [#allocation6], 1 }
 0xaaa   :  { %1856 = vsyncpa [#allocation6 + $0x1], 1 }

</bundles_post_ra>
